<compile_context>
chip_gen: v7x
topology: tpu7x:2x2x1
jax: 0.10.0
libtpu: 0.0.40
codegen_flags: <defaults>
</compile_context>

<pallas_src>
import functools

import jax
import jax.numpy as jnp
import numpy as np
from jax.experimental import pallas as pl
from jax.experimental.pallas import tpu as pltpu

HIDDEN = 8                  # hidden channels of conv1a
K = 8                       # conv1a kernel size (square)
CIN = 2                     # input channels
COUT = 2                    # output channels of conv1b
KKC = K * K * CIN           # 128 = im2col contraction depth
PAD_LO = (K - 1) // 2       # 3  (PyTorch 'same', even kernel)
PAD_HI = (K - 1) - PAD_LO   # 4


def block_kernel(x_ref, w1_ref, b1_ref, w2_ref, b2_ref,
                 out_ref, v_ref, xpad_ref, *, H, W, step_size):
    """Forward pass for one batch element (channel-major, spatial on lanes).

    x_ref    : (CIN, H*W)          input, f32
    w1_ref   : (HIDDEN, K*K*CIN)   conv1a weights, bf16, row f / col (kh,kw,c)
    b1_ref   : (HIDDEN, 1)         conv1a bias, f32
    w2_ref   : (COUT, HIDDEN)      conv1b (1x1) weights, f32
    b2_ref   : (COUT, 1)           conv1b bias, f32
    out_ref  : (COUT, H*W)         step_size * v + x
    v_ref    : (COUT, H*W)         v
    xpad_ref : (CIN, Lpad)         VMEM scratch: zero-padded, row-flattened image
    """
    Hp = H + K - 1
    Wp = W + K - 1
    S = H * Wp          # per-shift slice length (invalid columns dropped at the end)

    x = x_ref[...]                                   # (CIN, H*W) f32

    # ---- zero-padded, row-flattened image built in VMEM (no wrapper jnp.pad) ----
    xpad_ref[...] = jnp.zeros_like(xpad_ref)
    for i in range(H):                               # static unroll: H dense row copies
        dst = (i + PAD_LO) * Wp + PAD_LO
        xpad_ref[:, dst:dst + W] = x[:, i * W:(i + 1) * W]
    xpad = xpad_ref[...]                             # (CIN, Lpad) f32

    # ---- im2col: one 128-deep-contraction MXU matmul (replaces 64 tiny dots) ----
    # patches[(kh*K+kw)*CIN + c, i*Wp + j] = xpad2d[c, i+kh, j+kw]
    rows = []
    for kh in range(K):
        for kw in range(K):
            off = kh * Wp + kw
            rows.append(xpad[:, off:off + S])        # (CIN, S) lane-offset slice
    patches = jnp.concatenate(rows, axis=0)          # (KKC, S) = (128, H*Wp)

    acc = jnp.dot(w1_ref[...], patches.astype(jnp.bfloat16),
                  preferred_element_type=jnp.float32)        # (HIDDEN, S)
    acc = acc + b1_ref[...]                                  # bias broadcast over lanes

    # ELU (alpha=1).  Clamp the exp argument so the unselected branch stays finite.
    # TODO(synk): jnp.expm1 would match PyTorch's ELU slightly more accurately.
    ha = jnp.where(acc > 0, acc, jnp.exp(jnp.minimum(acc, 0.0)) - 1.0)

    # 1x1 conv == channel matmul, still channel-major / lane-dense.
    v_full = jnp.dot(w2_ref[...], ha,
                     preferred_element_type=jnp.float32) + b2_ref[...]   # (COUT, S)

    # Drop the (Wp - W) wrap-around columns of each image row -> (COUT, H*W).
    v = jnp.concatenate([v_full[:, i * Wp:i * Wp + W] for i in range(H)], axis=-1)

    v_ref[...] = v
    out_ref[...] = step_size * v + x                 # residual, lane-dense store


def block_forward(x_nchw, params, step_size):
    """Pallas implementation. x_nchw: (N, 2, H, W) float32 (PyTorch layout)."""
    w1, b1, w2, b2 = params          # w1: (K,K,CIN,HIDDEN) HWIO, b1: (HIDDEN,), w2: (HIDDEN,COUT), b2: (COUT,)
    N, C, H, W = x_nchw.shape
    assert C == CIN

    Hp, Wp = H + K - 1, W + K - 1
    Lpad = ((Hp * Wp + K + 127) // 128) * 128        # flat padded-image scratch length

    # One-time tiny weight re-layouts (kernel-side im2col ordering / transposed products).
    w1_mat = jnp.transpose(w1, (3, 0, 1, 2)).reshape(HIDDEN, KKC).astype(jnp.bfloat16)
    b1_col = b1.reshape(HIDDEN, 1).astype(jnp.float32)
    w2_t = jnp.transpose(w2, (1, 0)).astype(jnp.float32)     # (COUT, HIDDEN)
    b2_col = b2.reshape(COUT, 1).astype(jnp.float32)

    # Contiguous (free) reshape: stays NCHW / channel-major, spatial flattened on lanes.
    x_flat = x_nchw.reshape(N, CIN, H * W)

    kern = functools.partial(block_kernel, H=H, W=W, step_size=float(step_size))
    out_flat, v_flat = pl.pallas_call(
        kern,
        out_shape=(jax.ShapeDtypeStruct((N, COUT, H * W), jnp.float32),
                   jax.ShapeDtypeStruct((N, COUT, H * W), jnp.float32)),
        grid=(N,),
        in_specs=[
            pl.BlockSpec((None, CIN, H * W), lambda n: (n, 0, 0)),
            pl.BlockSpec((HIDDEN, KKC), lambda n: (0, 0)),
            pl.BlockSpec((HIDDEN, 1), lambda n: (0, 0)),
            pl.BlockSpec((COUT, HIDDEN), lambda n: (0, 0)),
            pl.BlockSpec((COUT, 1), lambda n: (0, 0)),
        ],
        out_specs=(
            pl.BlockSpec((None, COUT, H * W), lambda n: (n, 0, 0)),
            pl.BlockSpec((None, COUT, H * W), lambda n: (n, 0, 0)),
        ),
        scratch_shapes=[pltpu.VMEM((CIN, Lpad), jnp.float32)],
        compiler_params=pltpu.CompilerParams(
            dimension_semantics=("parallel",)),
    )(x_flat, w1_mat, b1_col, w2_t, b2_col)

    # Trailing-dim split is a free metadata reshape; result is already NCHW.
    return (out_flat.reshape(N, COUT, H, W), v_flat.reshape(N, COUT, H, W))


def reference_forward(x_nchw, params, step_size):
    """Pure-JAX reference (XLA conv) for numerical validation."""
    w1, b1, w2, b2 = params
    x = jnp.transpose(x_nchw, (0, 2, 3, 1))
    ha = jax.lax.conv_general_dilated(
        x, w1, window_strides=(1, 1),
        padding=((PAD_LO, PAD_HI), (PAD_LO, PAD_HI)),
        dimension_numbers=("NHWC", "HWIO", "NHWC"),
        precision=jax.lax.Precision.HIGHEST)
    ha = ha + b1.reshape(1, 1, 1, HIDDEN)
    ha = jnp.where(ha > 0, ha, jnp.exp(ha) - 1.0)
    v = jnp.einsum("nhwc,cf->nhwf", ha, w2,
                   precision=jax.lax.Precision.HIGHEST) + b2.reshape(1, 1, 1, COUT)
    out = step_size * v + x
    return jnp.transpose(out, (0, 3, 1, 2)), jnp.transpose(v, (0, 3, 1, 2))


if __name__ == "__main__":
    key = jax.random.PRNGKey(0)
    k1, k2, k3, k4, kx = jax.random.split(key, 5)

    # Deterministic, PyTorch-default-style (kaiming-uniform bound) init.
    bound1 = 1.0 / np.sqrt(CIN * K * K)
    w1 = jax.random.uniform(k1, (K, K, CIN, HIDDEN), jnp.float32, -bound1, bound1)
    b1 = jax.random.uniform(k2, (HIDDEN,), jnp.float32, -bound1, bound1)
    bound2 = 1.0 / np.sqrt(HIDDEN * 1 * 1)
    w2 = jax.random.uniform(k3, (HIDDEN, COUT), jnp.float32, -bound2, bound2)
    b2 = jax.random.uniform(k4, (COUT,), jnp.float32, -bound2, bound2)
    params = (w1, b1, w2, b2)

    step_size = 0.1
    x = jax.random.normal(kx, (2, CIN, 16, 16), jnp.float32)   # NCHW like PyTorch

    out, v = jax.block_until_ready(block_forward(x, params, step_size))

    ref_out, ref_v = reference_forward(x, params, step_size)
    np.testing.assert_allclose(np.asarray(out), np.asarray(ref_out),
                               rtol=1e-2, atol=1e-2)
    np.testing.assert_allclose(np.asarray(v), np.asarray(ref_v),
                               rtol=1e-2, atol=1e-2)

    print("KERNEL_OK")
</pallas_src>

<mosaic_0001>
module attributes {stable_mosaic.version = 11 : i64} {
  func.func @block_kernel(%arg0: i32, %arg1: memref<1x2x256xf32, #tpu.memory_space<vmem>>, %arg2: memref<8x128xbf16, #tpu.memory_space<vmem>>, %arg3: memref<8x1xf32, #tpu.memory_space<vmem>>, %arg4: memref<2x8xf32, #tpu.memory_space<vmem>>, %arg5: memref<2x1xf32, #tpu.memory_space<vmem>>, %arg6: memref<1x2x256xf32, #tpu.memory_space<vmem>>, %arg7: memref<1x2x256xf32, #tpu.memory_space<vmem>>, %arg8: memref<2x640xf32, #tpu.memory_space<vmem>>) attributes {dimension_semantics = [#tpu.dimension_semantics<parallel>], iteration_bounds = array<i64: 2>, scalar_prefetch = 0 : i64, scratch_operands = 1 : i64, tpu.core_type = #tpu.core_type<tc>, window_params = [{transform_indices = @transform_0, window_bounds = array<i64: 1, 2, 256>}, {pipeline_mode = #tpu.pipeline_mode<synchronous>, transform_indices = @transform_1, window_bounds = array<i64: 8, 128>}, {pipeline_mode = #tpu.pipeline_mode<synchronous>, transform_indices = @transform_2, window_bounds = array<i64: 8, 1>}, {pipeline_mode = #tpu.pipeline_mode<synchronous>, transform_indices = @transform_3, window_bounds = array<i64: 2, 8>}, {pipeline_mode = #tpu.pipeline_mode<synchronous>, transform_indices = @transform_4, window_bounds = array<i64: 2, 1>}, {transform_indices = @transform_5, window_bounds = array<i64: 1, 2, 256>}, {transform_indices = @transform_6, window_bounds = array<i64: 1, 2, 256>}]} {
    %c0 = arith.constant 0 : index
    %c0_0 = arith.constant 0 : index
    %c0_1 = arith.constant 0 : index
    %0 = vector.load %arg1[%c0, %c0_0, %c0_1] : memref<1x2x256xf32, #tpu.memory_space<vmem>>, vector<1x2x256xf32>
    %1 = vector.shape_cast %0 : vector<1x2x256xf32> to vector<2x256xf32>
    %cst = arith.constant 0.000000e+00 : f32
    %2 = vector.broadcast %cst : f32 to vector<2x640xf32>
    %c0_2 = arith.constant 0 : index
    %c0_3 = arith.constant 0 : index
    %3 = vector.load %arg8[%c0_2, %c0_3] : memref<2x640xf32, #tpu.memory_space<vmem>>, vector<2x640xf32>
    tpu.vector_store %arg8[%c0_2, %c0_3], %2 {strides = array<i32>} : memref<2x640xf32, #tpu.memory_space<vmem>>, vector<2x640xf32>,
    %4 = vector.extract_strided_slice %1 {offsets = [0, 0], sizes = [2, 16], strides = [1, 1]} : vector<2x256xf32> to vector<2x16xf32>
    %c0_4 = arith.constant 0 : index
    %c72 = arith.constant 72 : index
    %5 = vector.load %arg8[%c0_4, %c72] : memref<2x640xf32, #tpu.memory_space<vmem>>, vector<2x16xf32>
    tpu.vector_store %arg8[%c0_4, %c72], %4 {strides = array<i32>} : memref<2x640xf32, #tpu.memory_space<vmem>>, vector<2x16xf32>,
    %6 = vector.extract_strided_slice %1 {offsets = [0, 16], sizes = [2, 16], strides = [1, 1]} : vector<2x256xf32> to vector<2x16xf32>
    %c0_5 = arith.constant 0 : index
    %c95 = arith.constant 95 : index
    %7 = vector.load %arg8[%c0_5, %c95] : memref<2x640xf32, #tpu.memory_space<vmem>>, vector<2x16xf32>
    tpu.vector_store %arg8[%c0_5, %c95], %6 {strides = array<i32>} : memref<2x640xf32, #tpu.memory_space<vmem>>, vector<2x16xf32>,
    %8 = vector.extract_strided_slice %1 {offsets = [0, 32], sizes = [2, 16], strides = [1, 1]} : vector<2x256xf32> to vector<2x16xf32>
    %c0_6 = arith.constant 0 : index
    %c118 = arith.constant 118 : index
    %9 = vector.load %arg8[%c0_6, %c118] : memref<2x640xf32, #tpu.memory_space<vmem>>, vector<2x16xf32>
    tpu.vector_store %arg8[%c0_6, %c118], %8 {strides = array<i32>} : memref<2x640xf32, #tpu.memory_space<vmem>>, vector<2x16xf32>,
    %10 = vector.extract_strided_slice %1 {offsets = [0, 48], sizes = [2, 16], strides = [1, 1]} : vector<2x256xf32> to vector<2x16xf32>
    %c0_7 = arith.constant 0 : index
    %c141 = arith.constant 141 : index
    %11 = vector.load %arg8[%c0_7, %c141] : memref<2x640xf32, #tpu.memory_space<vmem>>, vector<2x16xf32>
    tpu.vector_store %arg8[%c0_7, %c141], %10 {strides = array<i32>} : memref<2x640xf32, #tpu.memory_space<vmem>>, vector<2x16xf32>,
    %12 = vector.extract_strided_slice %1 {offsets = [0, 64], sizes = [2, 16], strides = [1, 1]} : vector<2x256xf32> to vector<2x16xf32>
    %c0_8 = arith.constant 0 : index
    %c164 = arith.constant 164 : index
    %13 = vector.load %arg8[%c0_8, %c164] : memref<2x640xf32, #tpu.memory_space<vmem>>, vector<2x16xf32>
    tpu.vector_store %arg8[%c0_8, %c164], %12 {strides = array<i32>} : memref<2x640xf32, #tpu.memory_space<vmem>>, vector<2x16xf32>,
    %14 = vector.extract_strided_slice %1 {offsets = [0, 80], sizes = [2, 16], strides = [1, 1]} : vector<2x256xf32> to vector<2x16xf32>
    %c0_9 = arith.constant 0 : index
    %c187 = arith.constant 187 : index
    %15 = vector.load %arg8[%c0_9, %c187] : memref<2x640xf32, #tpu.memory_space<vmem>>, vector<2x16xf32>
    tpu.vector_store %arg8[%c0_9, %c187], %14 {strides = array<i32>} : memref<2x640xf32, #tpu.memory_space<vmem>>, vector<2x16xf32>,
    %16 = vector.extract_strided_slice %1 {offsets = [0, 96], sizes = [2, 16], strides = [1, 1]} : vector<2x256xf32> to vector<2x16xf32>
    %c0_10 = arith.constant 0 : index
    %c210 = arith.constant 210 : index
    %17 = vector.load %arg8[%c0_10, %c210] : memref<2x640xf32, #tpu.memory_space<vmem>>, vector<2x16xf32>
    tpu.vector_store %arg8[%c0_10, %c210], %16 {strides = array<i32>} : memref<2x640xf32, #tpu.memory_space<vmem>>, vector<2x16xf32>,
    %18 = vector.extract_strided_slice %1 {offsets = [0, 112], sizes = [2, 16], strides = [1, 1]} : vector<2x256xf32> to vector<2x16xf32>
    %c0_11 = arith.constant 0 : index
    %c233 = arith.constant 233 : index
    %19 = vector.load %arg8[%c0_11, %c233] : memref<2x640xf32, #tpu.memory_space<vmem>>, vector<2x16xf32>
    tpu.vector_store %arg8[%c0_11, %c233], %18 {strides = array<i32>} : memref<2x640xf32, #tpu.memory_space<vmem>>, vector<2x16xf32>,
    %20 = vector.extract_strided_slice %1 {offsets = [0, 128], sizes = [2, 16], strides = [1, 1]} : vector<2x256xf32> to vector<2x16xf32>
    %c0_12 = arith.constant 0 : index
    %c256 = arith.constant 256 : index
    %21 = vector.load %arg8[%c0_12, %c256] : memref<2x640xf32, #tpu.memory_space<vmem>>, vector<2x16xf32>
    tpu.vector_store %arg8[%c0_12, %c256], %20 {strides = array<i32>} : memref<2x640xf32, #tpu.memory_space<vmem>>, vector<2x16xf32>,
    %22 = vector.extract_strided_slice %1 {offsets = [0, 144], sizes = [2, 16], strides = [1, 1]} : vector<2x256xf32> to vector<2x16xf32>
    %c0_13 = arith.constant 0 : index
    %c279 = arith.constant 279 : index
    %23 = vector.load %arg8[%c0_13, %c279] : memref<2x640xf32, #tpu.memory_space<vmem>>, vector<2x16xf32>
    tpu.vector_store %arg8[%c0_13, %c279], %22 {strides = array<i32>} : memref<2x640xf32, #tpu.memory_space<vmem>>, vector<2x16xf32>,
    %24 = vector.extract_strided_slice %1 {offsets = [0, 160], sizes = [2, 16], strides = [1, 1]} : vector<2x256xf32> to vector<2x16xf32>
    %c0_14 = arith.constant 0 : index
    %c302 = arith.constant 302 : index
    %25 = vector.load %arg8[%c0_14, %c302] : memref<2x640xf32, #tpu.memory_space<vmem>>, vector<2x16xf32>
    tpu.vector_store %arg8[%c0_14, %c302], %24 {strides = array<i32>} : memref<2x640xf32, #tpu.memory_space<vmem>>, vector<2x16xf32>,
    %26 = vector.extract_strided_slice %1 {offsets = [0, 176], sizes = [2, 16], strides = [1, 1]} : vector<2x256xf32> to vector<2x16xf32>
    %c0_15 = arith.constant 0 : index
    %c325 = arith.constant 325 : index
    %27 = vector.load %arg8[%c0_15, %c325] : memref<2x640xf32, #tpu.memory_space<vmem>>, vector<2x16xf32>
    tpu.vector_store %arg8[%c0_15, %c325], %26 {strides = array<i32>} : memref<2x640xf32, #tpu.memory_space<vmem>>, vector<2x16xf32>,
    %28 = vector.extract_strided_slice %1 {offsets = [0, 192], sizes = [2, 16], strides = [1, 1]} : vector<2x256xf32> to vector<2x16xf32>
    %c0_16 = arith.constant 0 : index
    %c348 = arith.constant 348 : index
    %29 = vector.load %arg8[%c0_16, %c348] : memref<2x640xf32, #tpu.memory_space<vmem>>, vector<2x16xf32>
    tpu.vector_store %arg8[%c0_16, %c348], %28 {strides = array<i32>} : memref<2x640xf32, #tpu.memory_space<vmem>>, vector<2x16xf32>,
    %30 = vector.extract_strided_slice %1 {offsets = [0, 208], sizes = [2, 16], strides = [1, 1]} : vector<2x256xf32> to vector<2x16xf32>
    %c0_17 = arith.constant 0 : index
    %c371 = arith.constant 371 : index
    %31 = vector.load %arg8[%c0_17, %c371] : memref<2x640xf32, #tpu.memory_space<vmem>>, vector<2x16xf32>
    tpu.vector_store %arg8[%c0_17, %c371], %30 {strides = array<i32>} : memref<2x640xf32, #tpu.memory_space<vmem>>, vector<2x16xf32>,
    %32 = vector.extract_strided_slice %1 {offsets = [0, 224], sizes = [2, 16], strides = [1, 1]} : vector<2x256xf32> to vector<2x16xf32>
    %c0_18 = arith.constant 0 : index
    %c394 = arith.constant 394 : index
    %33 = vector.load %arg8[%c0_18, %c394] : memref<2x640xf32, #tpu.memory_space<vmem>>, vector<2x16xf32>
    tpu.vector_store %arg8[%c0_18, %c394], %32 {strides = array<i32>} : memref<2x640xf32, #tpu.memory_space<vmem>>, vector<2x16xf32>,
    %34 = vector.extract_strided_slice %1 {offsets = [0, 240], sizes = [2, 16], strides = [1, 1]} : vector<2x256xf32> to vector<2x16xf32>
    %c0_19 = arith.constant 0 : index
    %c417 = arith.constant 417 : index
    %35 = vector.load %arg8[%c0_19, %c417] : memref<2x640xf32, #tpu.memory_space<vmem>>, vector<2x16xf32>
    tpu.vector_store %arg8[%c0_19, %c417], %34 {strides = array<i32>} : memref<2x640xf32, #tpu.memory_space<vmem>>, vector<2x16xf32>,
    %c0_20 = arith.constant 0 : index
    %c0_21 = arith.constant 0 : index
    %36 = vector.load %arg8[%c0_20, %c0_21] : memref<2x640xf32, #tpu.memory_space<vmem>>, vector<2x640xf32>
    %37 = vector.extract_strided_slice %36 {offsets = [0, 0], sizes = [2, 368], strides = [1, 1]} : vector<2x640xf32> to vector<2x368xf32>
    %38 = vector.extract_strided_slice %36 {offsets = [0, 1], sizes = [2, 368], strides = [1, 1]} : vector<2x640xf32> to vector<2x368xf32>
    %39 = vector.extract_strided_slice %36 {offsets = [0, 2], sizes = [2, 368], strides = [1, 1]} : vector<2x640xf32> to vector<2x368xf32>
    %40 = vector.extract_strided_slice %36 {offsets = [0, 3], sizes = [2, 368], strides = [1, 1]} : vector<2x640xf32> to vector<2x368xf32>
    %41 = vector.extract_strided_slice %36 {offsets = [0, 4], sizes = [2, 368], strides = [1, 1]} : vector<2x640xf32> to vector<2x368xf32>
    %42 = vector.extract_strided_slice %36 {offsets = [0, 5], sizes = [2, 368], strides = [1, 1]} : vector<2x640xf32> to vector<2x368xf32>
    %43 = vector.extract_strided_slice %36 {offsets = [0, 6], sizes = [2, 368], strides = [1, 1]} : vector<2x640xf32> to vector<2x368xf32>
    %44 = vector.extract_strided_slice %36 {offsets = [0, 7], sizes = [2, 368], strides = [1, 1]} : vector<2x640xf32> to vector<2x368xf32>
    %45 = vector.extract_strided_slice %36 {offsets = [0, 23], sizes = [2, 368], strides = [1, 1]} : vector<2x640xf32> to vector<2x368xf32>
    %46 = vector.extract_strided_slice %36 {offsets = [0, 24], sizes = [2, 368], strides = [1, 1]} : vector<2x640xf32> to vector<2x368xf32>
    %47 = vector.extract_strided_slice %36 {offsets = [0, 25], sizes = [2, 368], strides = [1, 1]} : vector<2x640xf32> to vector<2x368xf32>
    %48 = vector.extract_strided_slice %36 {offsets = [0, 26], sizes = [2, 368], strides = [1, 1]} : vector<2x640xf32> to vector<2x368xf32>
    %49 = vector.extract_strided_slice %36 {offsets = [0, 27], sizes = [2, 368], strides = [1, 1]} : vector<2x640xf32> to vector<2x368xf32>
    %50 = vector.extract_strided_slice %36 {offsets = [0, 28], sizes = [2, 368], strides = [1, 1]} : vector<2x640xf32> to vector<2x368xf32>
    %51 = vector.extract_strided_slice %36 {offsets = [0, 29], sizes = [2, 368], strides = [1, 1]} : vector<2x640xf32> to vector<2x368xf32>
    %52 = vector.extract_strided_slice %36 {offsets = [0, 30], sizes = [2, 368], strides = [1, 1]} : vector<2x640xf32> to vector<2x368xf32>
    %53 = vector.extract_strided_slice %36 {offsets = [0, 46], sizes = [2, 368], strides = [1, 1]} : vector<2x640xf32> to vector<2x368xf32>
    %54 = vector.extract_strided_slice %36 {offsets = [0, 47], sizes = [2, 368], strides = [1, 1]} : vector<2x640xf32> to vector<2x368xf32>
    %55 = vector.extract_strided_slice %36 {offsets = [0, 48], sizes = [2, 368], strides = [1, 1]} : vector<2x640xf32> to vector<2x368xf32>
    %56 = vector.extract_strided_slice %36 {offsets = [0, 49], sizes = [2, 368], strides = [1, 1]} : vector<2x640xf32> to vector<2x368xf32>
    %57 = vector.extract_strided_slice %36 {offsets = [0, 50], sizes = [2, 368], strides = [1, 1]} : vector<2x640xf32> to vector<2x368xf32>
    %58 = vector.extract_strided_slice %36 {offsets = [0, 51], sizes = [2, 368], strides = [1, 1]} : vector<2x640xf32> to vector<2x368xf32>
    %59 = vector.extract_strided_slice %36 {offsets = [0, 52], sizes = [2, 368], strides = [1, 1]} : vector<2x640xf32> to vector<2x368xf32>
    %60 = vector.extract_strided_slice %36 {offsets = [0, 53], sizes = [2, 368], strides = [1, 1]} : vector<2x640xf32> to vector<2x368xf32>
    %61 = vector.extract_strided_slice %36 {offsets = [0, 69], sizes = [2, 368], strides = [1, 1]} : vector<2x640xf32> to vector<2x368xf32>
    %62 = vector.extract_strided_slice %36 {offsets = [0, 70], sizes = [2, 368], strides = [1, 1]} : vector<2x640xf32> to vector<2x368xf32>
    %63 = vector.extract_strided_slice %36 {offsets = [0, 71], sizes = [2, 368], strides = [1, 1]} : vector<2x640xf32> to vector<2x368xf32>
    %64 = vector.extract_strided_slice %36 {offsets = [0, 72], sizes = [2, 368], strides = [1, 1]} : vector<2x640xf32> to vector<2x368xf32>
    %65 = vector.extract_strided_slice %36 {offsets = [0, 73], sizes = [2, 368], strides = [1, 1]} : vector<2x640xf32> to vector<2x368xf32>
    %66 = vector.extract_strided_slice %36 {offsets = [0, 74], sizes = [2, 368], strides = [1, 1]} : vector<2x640xf32> to vector<2x368xf32>
    %67 = vector.extract_strided_slice %36 {offsets = [0, 75], sizes = [2, 368], strides = [1, 1]} : vector<2x640xf32> to vector<2x368xf32>
    %68 = vector.extract_strided_slice %36 {offsets = [0, 76], sizes = [2, 368], strides = [1, 1]} : vector<2x640xf32> to vector<2x368xf32>
    %69 = vector.extract_strided_slice %36 {offsets = [0, 92], sizes = [2, 368], strides = [1, 1]} : vector<2x640xf32> to vector<2x368xf32>
    %70 = vector.extract_strided_slice %36 {offsets = [0, 93], sizes = [2, 368], strides = [1, 1]} : vector<2x640xf32> to vector<2x368xf32>
    %71 = vector.extract_strided_slice %36 {offsets = [0, 94], sizes = [2, 368], strides = [1, 1]} : vector<2x640xf32> to vector<2x368xf32>
    %72 = vector.extract_strided_slice %36 {offsets = [0, 95], sizes = [2, 368], strides = [1, 1]} : vector<2x640xf32> to vector<2x368xf32>
    %73 = vector.extract_strided_slice %36 {offsets = [0, 96], sizes = [2, 368], strides = [1, 1]} : vector<2x640xf32> to vector<2x368xf32>
    %74 = vector.extract_strided_slice %36 {offsets = [0, 97], sizes = [2, 368], strides = [1, 1]} : vector<2x640xf32> to vector<2x368xf32>
    %75 = vector.extract_strided_slice %36 {offsets = [0, 98], sizes = [2, 368], strides = [1, 1]} : vector<2x640xf32> to vector<2x368xf32>
    %76 = vector.extract_strided_slice %36 {offsets = [0, 99], sizes = [2, 368], strides = [1, 1]} : vector<2x640xf32> to vector<2x368xf32>
    %77 = vector.extract_strided_slice %36 {offsets = [0, 115], sizes = [2, 368], strides = [1, 1]} : vector<2x640xf32> to vector<2x368xf32>
    %78 = vector.extract_strided_slice %36 {offsets = [0, 116], sizes = [2, 368], strides = [1, 1]} : vector<2x640xf32> to vector<2x368xf32>
    %79 = vector.extract_strided_slice %36 {offsets = [0, 117], sizes = [2, 368], strides = [1, 1]} : vector<2x640xf32> to vector<2x368xf32>
    %80 = vector.extract_strided_slice %36 {offsets = [0, 118], sizes = [2, 368], strides = [1, 1]} : vector<2x640xf32> to vector<2x368xf32>
    %81 = vector.extract_strided_slice %36 {offsets = [0, 119], sizes = [2, 368], strides = [1, 1]} : vector<2x640xf32> to vector<2x368xf32>
    %82 = vector.extract_strided_slice %36 {offsets = [0, 120], sizes = [2, 368], strides = [1, 1]} : vector<2x640xf32> to vector<2x368xf32>
    %83 = vector.extract_strided_slice %36 {offsets = [0, 121], sizes = [2, 368], strides = [1, 1]} : vector<2x640xf32> to vector<2x368xf32>
    %84 = vector.extract_strided_slice %36 {offsets = [0, 122], sizes = [2, 368], strides = [1, 1]} : vector<2x640xf32> to vector<2x368xf32>
    %85 = vector.extract_strided_slice %36 {offsets = [0, 138], sizes = [2, 368], strides = [1, 1]} : vector<2x640xf32> to vector<2x368xf32>
    %86 = vector.extract_strided_slice %36 {offsets = [0, 139], sizes = [2, 368], strides = [1, 1]} : vector<2x640xf32> to vector<2x368xf32>
    %87 = vector.extract_strided_slice %36 {offsets = [0, 140], sizes = [2, 368], strides = [1, 1]} : vector<2x640xf32> to vector<2x368xf32>
    %88 = vector.extract_strided_slice %36 {offsets = [0, 141], sizes = [2, 368], strides = [1, 1]} : vector<2x640xf32> to vector<2x368xf32>
    %89 = vector.extract_strided_slice %36 {offsets = [0, 142], sizes = [2, 368], strides = [1, 1]} : vector<2x640xf32> to vector<2x368xf32>
    %90 = vector.extract_strided_slice %36 {offsets = [0, 143], sizes = [2, 368], strides = [1, 1]} : vector<2x640xf32> to vector<2x368xf32>
    %91 = vector.extract_strided_slice %36 {offsets = [0, 144], sizes = [2, 368], strides = [1, 1]} : vector<2x640xf32> to vector<2x368xf32>
    %92 = vector.extract_strided_slice %36 {offsets = [0, 145], sizes = [2, 368], strides = [1, 1]} : vector<2x640xf32> to vector<2x368xf32>
    %93 = vector.extract_strided_slice %36 {offsets = [0, 161], sizes = [2, 368], strides = [1, 1]} : vector<2x640xf32> to vector<2x368xf32>
    %94 = vector.extract_strided_slice %36 {offsets = [0, 162], sizes = [2, 368], strides = [1, 1]} : vector<2x640xf32> to vector<2x368xf32>
    %95 = vector.extract_strided_slice %36 {offsets = [0, 163], sizes = [2, 368], strides = [1, 1]} : vector<2x640xf32> to vector<2x368xf32>
    %96 = vector.extract_strided_slice %36 {offsets = [0, 164], sizes = [2, 368], strides = [1, 1]} : vector<2x640xf32> to vector<2x368xf32>
    %97 = vector.extract_strided_slice %36 {offsets = [0, 165], sizes = [2, 368], strides = [1, 1]} : vector<2x640xf32> to vector<2x368xf32>
    %98 = vector.extract_strided_slice %36 {offsets = [0, 166], sizes = [2, 368], strides = [1, 1]} : vector<2x640xf32> to vector<2x368xf32>
    %99 = vector.extract_strided_slice %36 {offsets = [0, 167], sizes = [2, 368], strides = [1, 1]} : vector<2x640xf32> to vector<2x368xf32>
    %100 = vector.extract_strided_slice %36 {offsets = [0, 168], sizes = [2, 368], strides = [1, 1]} : vector<2x640xf32> to vector<2x368xf32>
    %101 = tpu.concatenate %37, %38, %39, %40, %41, %42, %43, %44, %45, %46, %47, %48, %49, %50, %51, %52 in 0 : vector<2x368xf32>, vector<2x368xf32>, vector<2x368xf32>, vector<2x368xf32>, vector<2x368xf32>, vector<2x368xf32>, vector<2x368xf32>, vector<2x368xf32>, vector<2x368xf32>, vector<2x368xf32>, vector<2x368xf32>, vector<2x368xf32>, vector<2x368xf32>, vector<2x368xf32>, vector<2x368xf32>, vector<2x368xf32> -> vector<32x368xf32>
    %102 = tpu.concatenate %53, %54, %55, %56, %57, %58, %59, %60, %61, %62, %63, %64, %65, %66, %67, %68 in 0 : vector<2x368xf32>, vector<2x368xf32>, vector<2x368xf32>, vector<2x368xf32>, vector<2x368xf32>, vector<2x368xf32>, vector<2x368xf32>, vector<2x368xf32>, vector<2x368xf32>, vector<2x368xf32>, vector<2x368xf32>, vector<2x368xf32>, vector<2x368xf32>, vector<2x368xf32>, vector<2x368xf32>, vector<2x368xf32> -> vector<32x368xf32>
    %103 = tpu.concatenate %69, %70, %71, %72, %73, %74, %75, %76, %77, %78, %79, %80, %81, %82, %83, %84 in 0 : vector<2x368xf32>, vector<2x368xf32>, vector<2x368xf32>, vector<2x368xf32>, vector<2x368xf32>, vector<2x368xf32>, vector<2x368xf32>, vector<2x368xf32>, vector<2x368xf32>, vector<2x368xf32>, vector<2x368xf32>, vector<2x368xf32>, vector<2x368xf32>, vector<2x368xf32>, vector<2x368xf32>, vector<2x368xf32> -> vector<32x368xf32>
    %104 = tpu.concatenate %85, %86, %87, %88, %89, %90, %91, %92, %93, %94, %95, %96, %97, %98, %99, %100 in 0 : vector<2x368xf32>, vector<2x368xf32>, vector<2x368xf32>, vector<2x368xf32>, vector<2x368xf32>, vector<2x368xf32>, vector<2x368xf32>, vector<2x368xf32>, vector<2x368xf32>, vector<2x368xf32>, vector<2x368xf32>, vector<2x368xf32>, vector<2x368xf32>, vector<2x368xf32>, vector<2x368xf32>, vector<2x368xf32> -> vector<32x368xf32>
    %105 = tpu.concatenate %101, %102, %103, %104 in 0 : vector<32x368xf32>, vector<32x368xf32>, vector<32x368xf32>, vector<32x368xf32> -> vector<128x368xf32>
    %c0_22 = arith.constant 0 : index
    %c0_23 = arith.constant 0 : index
    %106 = vector.load %arg2[%c0_22, %c0_23] : memref<8x128xbf16, #tpu.memory_space<vmem>>, vector<8x128xbf16>
    %107 = arith.truncf %105 : vector<128x368xf32> to vector<128x368xbf16>
    %cst_24 = arith.constant dense<0.000000e+00> : vector<8x368xf32>
    %108 = tpu.matmul %106, %107, %cst_24 {dimension_numbers = #tpu.dot_dimension_numbers<[1], [0], [0], [1], [0, 0, 1, 1], [], []>} : vector<8x128xbf16>, vector<128x368xbf16>, vector<8x368xf32> -> vector<8x368xf32>
    %c0_25 = arith.constant 0 : index
    %c0_26 = arith.constant 0 : index
    %109 = vector.load %arg3[%c0_25, %c0_26] : memref<8x1xf32, #tpu.memory_space<vmem>>, vector<8x1xf32>
    %110 = vector.broadcast %109 : vector<8x1xf32> to vector<8x368xf32>
    %111 = arith.addf %108, %110 : vector<8x368xf32>
    %cst_27 = arith.constant 0.000000e+00 : f32
    %112 = vector.broadcast %cst_27 : f32 to vector<8x368xf32>
    %113 = arith.cmpf ogt, %111, %112 : vector<8x368xf32>
    %cst_28 = arith.constant 0.000000e+00 : f32
    %114 = vector.broadcast %cst_28 : f32 to vector<8x368xf32>
    %115 = arith.minimumf %111, %114 : vector<8x368xf32>
    %116 = math.exp %115 : vector<8x368xf32>
    %cst_29 = arith.constant 1.000000e+00 : f32
    %117 = vector.broadcast %cst_29 : f32 to vector<8x368xf32>
    %118 = arith.subf %116, %117 : vector<8x368xf32>
    %119 = arith.select %113, %111, %118 : vector<8x368xi1>, vector<8x368xf32>
    %c0_30 = arith.constant 0 : index
    %c0_31 = arith.constant 0 : index
    %120 = vector.load %arg4[%c0_30, %c0_31] : memref<2x8xf32, #tpu.memory_space<vmem>>, vector<2x8xf32>
    %cst_32 = arith.constant dense<0.000000e+00> : vector<2x368xf32>
    %121 = tpu.matmul %120, %119, %cst_32 {dimension_numbers = #tpu.dot_dimension_numbers<[1], [0], [0], [1], [0, 0, 1, 1], [], []>} : vector<2x8xf32>, vector<8x368xf32>, vector<2x368xf32> -> vector<2x368xf32>
    %c0_33 = arith.constant 0 : index
    %c0_34 = arith.constant 0 : index
    %122 = vector.load %arg5[%c0_33, %c0_34] : memref<2x1xf32, #tpu.memory_space<vmem>>, vector<2x1xf32>
    %123 = vector.broadcast %122 : vector<2x1xf32> to vector<2x368xf32>
    %124 = arith.addf %121, %123 : vector<2x368xf32>
    %125 = vector.extract_strided_slice %124 {offsets = [0, 0], sizes = [2, 16], strides = [1, 1]} : vector<2x368xf32> to vector<2x16xf32>
    %126 = vector.extract_strided_slice %124 {offsets = [0, 23], sizes = [2, 16], strides = [1, 1]} : vector<2x368xf32> to vector<2x16xf32>
    %127 = vector.extract_strided_slice %124 {offsets = [0, 46], sizes = [2, 16], strides = [1, 1]} : vector<2x368xf32> to vector<2x16xf32>
    %128 = vector.extract_strided_slice %124 {offsets = [0, 69], sizes = [2, 16], strides = [1, 1]} : vector<2x368xf32> to vector<2x16xf32>
    %129 = vector.extract_strided_slice %124 {offsets = [0, 92], sizes = [2, 16], strides = [1, 1]} : vector<2x368xf32> to vector<2x16xf32>
    %130 = vector.extract_strided_slice %124 {offsets = [0, 115], sizes = [2, 16], strides = [1, 1]} : vector<2x368xf32> to vector<2x16xf32>
    %131 = vector.extract_strided_slice %124 {offsets = [0, 138], sizes = [2, 16], strides = [1, 1]} : vector<2x368xf32> to vector<2x16xf32>
    %132 = vector.extract_strided_slice %124 {offsets = [0, 161], sizes = [2, 16], strides = [1, 1]} : vector<2x368xf32> to vector<2x16xf32>
    %133 = vector.extract_strided_slice %124 {offsets = [0, 184], sizes = [2, 16], strides = [1, 1]} : vector<2x368xf32> to vector<2x16xf32>
    %134 = vector.extract_strided_slice %124 {offsets = [0, 207], sizes = [2, 16], strides = [1, 1]} : vector<2x368xf32> to vector<2x16xf32>
    %135 = vector.extract_strided_slice %124 {offsets = [0, 230], sizes = [2, 16], strides = [1, 1]} : vector<2x368xf32> to vector<2x16xf32>
    %136 = vector.extract_strided_slice %124 {offsets = [0, 253], sizes = [2, 16], strides = [1, 1]} : vector<2x368xf32> to vector<2x16xf32>
    %137 = vector.extract_strided_slice %124 {offsets = [0, 276], sizes = [2, 16], strides = [1, 1]} : vector<2x368xf32> to vector<2x16xf32>
    %138 = vector.extract_strided_slice %124 {offsets = [0, 299], sizes = [2, 16], strides = [1, 1]} : vector<2x368xf32> to vector<2x16xf32>
    %139 = vector.extract_strided_slice %124 {offsets = [0, 322], sizes = [2, 16], strides = [1, 1]} : vector<2x368xf32> to vector<2x16xf32>
    %140 = vector.extract_strided_slice %124 {offsets = [0, 345], sizes = [2, 16], strides = [1, 1]} : vector<2x368xf32> to vector<2x16xf32>
    %141 = tpu.concatenate %125, %126, %127, %128, %129, %130, %131, %132, %133, %134, %135, %136, %137, %138, %139, %140 in 1 : vector<2x16xf32>, vector<2x16xf32>, vector<2x16xf32>, vector<2x16xf32>, vector<2x16xf32>, vector<2x16xf32>, vector<2x16xf32>, vector<2x16xf32>, vector<2x16xf32>, vector<2x16xf32>, vector<2x16xf32>, vector<2x16xf32>, vector<2x16xf32>, vector<2x16xf32>, vector<2x16xf32>, vector<2x16xf32> -> vector<2x256xf32>
    %c0_35 = arith.constant 0 : index
    %c0_36 = arith.constant 0 : index
    %c0_37 = arith.constant 0 : index
    %142 = vector.load %arg7[%c0_35, %c0_36, %c0_37] : memref<1x2x256xf32, #tpu.memory_space<vmem>>, vector<1x2x256xf32>
    %143 = vector.shape_cast %142 : vector<1x2x256xf32> to vector<2x256xf32>
    %144 = vector.shape_cast %141 : vector<2x256xf32> to vector<1x2x256xf32>
    tpu.vector_store %arg7[%c0_35, %c0_36, %c0_37], %144 {strides = array<i32>} : memref<1x2x256xf32, #tpu.memory_space<vmem>>, vector<1x2x256xf32>,
    %cst_38 = arith.constant 1.000000e-01 : f32
    %145 = vector.broadcast %cst_38 : f32 to vector<2x256xf32>
    %146 = arith.mulf %145, %141 : vector<2x256xf32>
    %147 = arith.addf %146, %1 : vector<2x256xf32>
    %c0_39 = arith.constant 0 : index
    %c0_40 = arith.constant 0 : index
    %c0_41 = arith.constant 0 : index
    %148 = vector.load %arg6[%c0_39, %c0_40, %c0_41] : memref<1x2x256xf32, #tpu.memory_space<vmem>>, vector<1x2x256xf32>
    %149 = vector.shape_cast %148 : vector<1x2x256xf32> to vector<2x256xf32>
    %150 = vector.shape_cast %147 : vector<2x256xf32> to vector<1x2x256xf32>
    tpu.vector_store %arg6[%c0_39, %c0_40, %c0_41], %150 {strides = array<i32>} : memref<1x2x256xf32, #tpu.memory_space<vmem>>, vector<1x2x256xf32>,
    return
  }
  func.func @transform_0(%arg0: i32) -> (i32, i32, i32) {
    %c0_i32 = arith.constant 0 : i32
    %c0_i32_0 = arith.constant 0 : i32
    %c0_i32_1 = arith.constant 0 : i32
    return %arg0, %c0_i32, %c0_i32_0 : i32, i32, i32
  }
  func.func @transform_1(%arg0: i32) -> (i32, i32) {
    %c0_i32 = arith.constant 0 : i32
    %c0_i32_0 = arith.constant 0 : i32
    %c0_i32_1 = arith.constant 0 : i32
    return %c0_i32, %c0_i32_0 : i32, i32
  }
  func.func @transform_2(%arg0: i32) -> (i32, i32) {
    %c0_i32 = arith.constant 0 : i32
    %c0_i32_0 = arith.constant 0 : i32
    %c0_i32_1 = arith.constant 0 : i32
    return %c0_i32, %c0_i32_0 : i32, i32
  }
  func.func @transform_3(%arg0: i32) -> (i32, i32) {
    %c0_i32 = arith.constant 0 : i32
    %c0_i32_0 = arith.constant 0 : i32
    %c0_i32_1 = arith.constant 0 : i32
    return %c0_i32, %c0_i32_0 : i32, i32
  }
  func.func @transform_4(%arg0: i32) -> (i32, i32) {
    %c0_i32 = arith.constant 0 : i32
    %c0_i32_0 = arith.constant 0 : i32
    %c0_i32_1 = arith.constant 0 : i32
    return %c0_i32, %c0_i32_0 : i32, i32
  }
  func.func @transform_5(%arg0: i32) -> (i32, i32, i32) {
    %c0_i32 = arith.constant 0 : i32
    %c0_i32_0 = arith.constant 0 : i32
    %c0_i32_1 = arith.constant 0 : i32
    return %arg0, %c0_i32, %c0_i32_0 : i32, i32, i32
  }
  func.func @transform_6(%arg0: i32) -> (i32, i32, i32) {
    %c0_i32 = arith.constant 0 : i32
    %c0_i32_0 = arith.constant 0 : i32
    %c0_i32_1 = arith.constant 0 : i32
    return %arg0, %c0_i32, %c0_i32_0 : i32, i32, i32
  }
}

</mosaic_0001>

<bundles_post_ra>
// kernel: tpu_custom_call.1
= control target key start
LH: loop header
LB: loop body
LE: loop exit
PB: predicated region body
PF: predicated region fallthrough
CT: control target
= control target key end

     0   :  { %12 = vsyncpa [#allocation4], 0  ;;  %s3364_s0 = inlined_call_operand.vmem [shape: f32[2,2,256], index: 0, kind: input, shape index: {}]   ;;  %s3365_s1 = inlined_call_operand.vmem [shape: bf16[8,128], index: 1, kind: input, shape index: {}]   ;;  %s3366_s2 = inlined_call_operand.vmem [shape: f32[8,1], index: 2, kind: input, shape index: {}]   ;;  %s3367_s3 = inlined_call_operand.vmem [shape: f32[2,8], index: 3, kind: input, shape index: {}]   ;;  %s3368_s4 = inlined_call_operand.vmem [shape: f32[2,1], index: 4, kind: input, shape index: {}]   ;;  %s3369_s5 = inlined_call_operand.hbm [shape: f32[2,2,256], index: 5, kind: output, shape index: {0}]   ;;  %s3370_s6 = inlined_call_operand.hbm [shape: f32[2,2,256], index: 6, kind: output, shape index: {1}]  }
   0x1   :  { %14 = vsyncpa [#allocation4 + $0x1], 0 }
   0x2   :  { %15 = vsyncpa [#allocation6], 0 }
   0x3   :  { %17 = vsyncpa [#allocation6 + $0x1], 0  ;;  %s2339_s21 = smov 0   ;;  %s2341_s22 = smov 0  }
   0x4   :  { %s2343_s23 = smov 0   ;;  %s2345_s24 = smov 0  }
   0x5 LB: > { %s2360_s25 = sadd.s32 4294967295, %s2245_s24   ;;  %s1632_s26 = sadd.s32 4294967294, %s2245_s24   ;;  %s2245_s24 = sphi %s2345_s24, %s3463_s24   ;;  %s2241_s23 = sphi %s2343_s23, %s3462_s23   ;;  %s2237_s22 = sphi %s2341_s22, %s3461_s22   ;;  %s2233_s21 = sphi %s2339_s21, %s3460_s21  }
   0x6   : > { %s2364_s27 = sadd.s32 1, %s2245_s24   ;;  %s140_s28 = sadd.s32 1, %s2241_s23 }
   0x7   : > { %s137_s29 = ssub.s32 %s2245_s24, %s2364_s27  ;;  %p150_p0 = scmp.ne.s32.totalorder %s2241_s23, %s2237_s22 }
   0x8   : > { %p138_p1 = scmp.eq.s32.totalorder %s137_s29, 0  ;;  %p151_p2 = scmp.eq.s32.totalorder %s2360_s25, 1 }
   0x9   : > { %p156_p3 = scmp.ne.s32.totalorder %s2237_s22, %s2233_s21  ;;  %p157_p4 = scmp.eq.s32.totalorder %s1632_s26, 1 }
   0xa   : > { %s2375_s30 = scalar_select %p138_p1, %s2241_s23, %s140_s28  }
   0xb   : > { %p2377_p5 = por %p151_p2, %p150_p0  ;;  %p2381_p6 = por %p157_p4, %p156_p3 }
   0xc   : > { %p1635_p7 = scmp.ge.s32.totalorder %s2245_s24, 1  ;;  %p221_p8 = scmp.lt.s32.totalorder %s2245_s24, 3 }
   0xe   : > { %p222_p9 = pnand %p1635_p7, %p221_p8 }
  0x10   : > { %225 = sbr.rel (%p222_p9) target bundleno = 1176 (0x498), region = 40 }
  0x17   : > { %p256_p10 = scmp.lt.s32.totalorder %s2360_s25, 1  ;;  %v3389_v0 = vmov 0.0   ;;  %vm313_vm0 = vcmask 123904   ;;  %s2248_s14 = smov 14   ;;  %vm326_vm1 = vcmask 113664   ;;  %vm318_vm2 = vcmask 56320  }
  0x18   : > { %263 = vst [vmem:[#allocation2] sm:$0xff] %v3389_v0  ;;  %264 = vst [vmem:[#allocation2 + $0x8] sm:$0x3] %v3389_v0  ;;  %1669 = vmatprep.subr.bf16.mxu1 %v3389_v0  ;;  %s2249_s15 = smov 7   ;;  %s3373_s16 = smov 72   ;;  %vm321_vm3 = vcmask 312504   ;;  %v376_v33 = vlaneseq }
  0x19   : > { %s257_s9 = scalar_select %p256_p10, %s2360_s25, 1  ;;  %vm269_vm4 = vcmask 714304   ;;  %vm329_vm5 = vcmask 501104   ;;  %vm282_vm6 = vcmask 1042352   ;;  %vm283_vm7 = vcmask 44034  }
  0x1a   : > { %s3372_s17 = smov 86   ;;  %s3371_s18 = smov 79   ;;  %vm279_vm8 = vcmask 703488   ;;  %vm274_vm9 = vcmask 902904   ;;  %vm284_vm10 = vmor %vm283_vm7, %vm282_vm6  ;;  %vm334_vm11 = vcmask 171008   ;;  %vm337_vm12 = vcmask 689704  }
  0x1b   : > { %s1655_s10 = sshll.u32 %s257_s9, 2  ;;  %s2253_s19 = smov 21   ;;  %vm353_vm13 = vcmask 1042328   ;;  %vm354_vm14 = vcmask 19458   ;;  %vm342_vm15 = vcmask 228352   ;;  %vm361_vm6 = vcmask 205904  }
  0x1c   : > { %s2395_s13 = scalar_lea.vmem %s3364_s0, %s1655_s10  ;;  %s2254_s20 = smov 28   ;;  %vm304_vm7 = vcmask 796304   ;;  %v2263_v31 = vmov 1983009808   ;;  %v377_v36 = vshrl.u32 %v376_v33, 7 }
  0x1d   : > { %v262_v1 = vld [vmem:[%s2395_s13] sm:$0xf]  ;;  %s2255_s26 = smov 35   ;;  %s3376_s28 = smov 93   ;;  %v374_v32 = vunpack.c.l.s4 %v2263_v31 }
  0x1e   : > { %323 = vrot.lane.b32.xlu1 %v262_v1, %s2248_s14  ;;  %315 = vrot.lane.b32.xlu0 %v262_v1, %s2249_s15  ;;  %v311_v2 = vrot.slane %v262_v1, 2  ;;  %s2257_s29 = smov 100   ;;  %s2258_s9 = smov 42  }
  0x1f   : > { %s3374_s10 = smov 107   ;;  %s2260_s11 = smov 49   ;;  %v375_v35 = vunpack.c.0.s8 %v374_v32  ;;  %v370_v60 = vld [vmem:[#allocation2 + $0x8] sm:$0x3] }
  0x20   : > { %314 = vst.msk [vmem:[#allocation2 + $0x4] sm:$0x3] %vm313_vm0, %v311_v2  ;;  %s2261_s12 = smov 114   ;;  %s2262_s14 = smov 121   ;;  %vm350_vm0 = vcmask 285696   ;;  %v794_v63 = vcombine.low %v370_v60, %v370_v60 }
  0x21   : > { %v2406_v37 = vsub.s32 %v375_v35, %v377_v36  ;;  %s3378_s15 = smov 116  }
  0x22   : > { %266 = vrot.lane.b32.xlu1 %v262_v1, %s3373_s16  ;;  %276 = vrot.lane.b32.xlu0 %v262_v1, %s3372_s17  ;;  %s2271_s17 = smov 101   ;;  %s2272_s16 = smov 123  }
  0x23   : > { %v808_v61 = vrot.slane %v370_v60, %v2406_v37 }
  0x26   : > { %271 = vrot.lane.b32.xlu1 %v262_v1, %s3371_s18  ;;  %331 = vrot.lane.b32.xlu0 %v262_v1, %s2253_s19  ;;  %s3375_s19 = smov 112   ;;  %s2270_s18 = smov 127  }
  0x2a   : > { %339 = vrot.lane.b32.xlu0 %v262_v1, %s2254_s20  ;;  %347 = vrot.lane.b32.xlu1 %v262_v1, %s2255_s26  ;;  %s2266_s20 = smov 126   ;;  %s3379_s26 = smov 125  }
  0x2e   : > { %286 = vrot.lane.b32.xlu0 %v262_v1, %s3376_s28  ;;  %291 = vrot.lane.b32.xlu1 %v262_v1, %s2257_s29  ;;  %s3381_s28 = smov 98  }
  0x32   : > { %357 = vrot.lane.b32.xlu0 %v262_v1, %s2258_s9  ;;  %296 = vrot.lane.b32.xlu1 %v262_v1, %s3374_s10  ;;  %s2268_s9 = smov 124   ;;  %s3380_s10 = smov 102  }
  0x36   : > { %363 = vrot.lane.b32.xlu0 %v262_v1, %s2260_s11  ;;  %301 = vrot.lane.b32.xlu1 %v262_v1, %s2261_s12  ;;  %s2269_s11 = smov 105  }
  0x3a   : > { %306 = vrot.lane.b32.xlu0 %v262_v1, %s2262_s14  ;;  %v801_v1 = vrot.slane %v794_v63, %v2406_v37 }
  0x3c   : > { %v2499_v2 = vcombine.low %v801_v1, %v801_v1 }
  0x3e   : > { %3415 = vst [vmem:[#allocation11_spill] sm:$0xff] %v2499_v2 }
  0x90   : > { %v324_v3 = vpop.permute.xlu1 %323  ;;  %v316_v4 = vpop.permute.xlu0 %315 }
  0x91   : > { %v325_v5 = vrot.slane %v324_v3, 2  ;;  %v317_v6 = vrot.slane %v316_v4, 2 }
  0x93   : > { %v327_v7 = vsel %vm326_vm1, %v324_v3, %v325_v5  ;;  %v319_v8 = vsel %vm318_vm2, %v316_v4, %v317_v6  ;;  %vm345_vm1 = vcmask 878304   ;;  %vm355_vm2 = vmor %vm354_vm14, %vm353_vm13  ;;  %v855_v6 = vcombine.low %v808_v61, %v808_v61 }
  0x94   : > { %322 = vst.msk [vmem:[#allocation2 + $0x4] sm:$0x3] %vm321_vm3, %v319_v8  ;;  %v267_v9 = vpop.permute.xlu1 %266  ;;  %v277_v10 = vpop.permute.xlu0 %276  ;;  %vm289_vm3 = vcmask 230504   ;;  %vm556_vm13 = vcmask 826368   ;;  %vm541_vm14 = vcmask 834560  }
  0x95   : > { %270 = vst.msk [vmem:[#allocation2] sm:$0x3] %vm269_vm4, %v267_v9  ;;  %v278_v11 = vrot.slane %v277_v10, 6  ;;  %vm294_vm4 = vcmask 419104  }
  0x96   : > { %330 = vst.msk [vmem:[#allocation2 + $0x4] sm:$0x3] %vm329_vm5, %v327_v7  ;;  %vm299_vm5 = vcmask 607704  }
  0x97   : > { %v280_v14 = vsel %vm279_vm8, %v278_v11, %v277_v10  ;;  %vm367_vm8 = vcmask 394504  }
  0x98   : > { %v272_v12 = vpop.permute.xlu1 %271  ;;  %v332_v13 = vpop.permute.xlu0 %331 }
  0x99   : > { %275 = vst.msk [vmem:[#allocation2] sm:$0x3] %vm274_vm9, %v272_v12  ;;  %v333_v15 = vrot.slane %v332_v13, 2  ;;  %vm309_vm9 = vcmask 984904  }
  0x9a   : > { %285 = vst.msk [vmem:[#allocation2] sm:$0xf] %vm284_vm10, %v280_v14  ;;  %vm445_vm10 = vcmask 1014784  }
  0x9b   : > { %v335_v16 = vsel %vm334_vm11, %v332_v13, %v333_v15  ;;  %vm496_vm11 = vcmask 859136  }
  0x9c   : > { %338 = vst.msk [vmem:[#allocation2 + $0x4] sm:$0x3] %vm337_vm12, %v335_v16  ;;  %v340_v17 = vpop.permute.xlu0 %339  ;;  %v348_v18 = vpop.permute.xlu1 %347  ;;  %vm608_vm12 = vcmask 1041408  }
  0x9d   : > { %v341_v19 = vrot.slane %v340_v17, 2  ;;  %v349_v20 = vrot.slane %v348_v18, 2 }
  0x9f   : > { %v343_v21 = vsel %vm342_vm15, %v340_v17, %v341_v19  ;;  %v351_v22 = vsel %vm350_vm0, %v348_v18, %v349_v20  ;;  %vm601_vm15 = vcmask 801792   ;;  %vm481_vm0 = vcmask 990208  }
  0xa0   : > { %346 = vst.msk [vmem:[#allocation2 + $0x4] sm:$0x3] %vm345_vm1, %v343_v21  ;;  %v287_v23 = vpop.permute.xlu0 %286  ;;  %v292_v24 = vpop.permute.xlu1 %291  ;;  %vm433_vm1 = vcmask 1022976  }
  0xa1   : > { %356 = vst.msk [vmem:[#allocation2 + $0x4] sm:$0xf] %vm355_vm2, %v351_v22  ;;  %vm612_vm2 = vcmask 1043456  }
  0xa2   : > { %290 = vst.msk [vmem:[#allocation2 + $0x2] sm:$0x3] %vm289_vm3, %v287_v23  ;;  %vm406_vm3 = vcmask 1039360  }
  0xa3   : > { %295 = vst.msk [vmem:[#allocation2 + $0x2] sm:$0x3] %vm294_vm4, %v292_v24  ;;  %vm457_vm4 = vcmask 1006592  }
  0xa4   : > { %v358_v25 = vpop.permute.xlu0 %357  ;;  %v297_v26 = vpop.permute.xlu1 %296 }
  0xa5   : > { %v359_v27 = vrot.slane %v358_v25, 2  ;;  %300 = vst.msk [vmem:[#allocation2 + $0x2] sm:$0x3] %vm299_vm5, %v297_v26  ;;  %vm469_vm5 = vcmask 998400  }
  0xa7   : > { %362 = vst.msk [vmem:[#allocation2 + $0x6] sm:$0x3] %vm361_vm6, %v359_v27  ;;  %vm420_vm6 = vcmask 1031168  }
  0xa8   : > { %v364_v28 = vpop.permute.xlu0 %363  ;;  %v302_v29 = vpop.permute.xlu1 %301 }
  0xa9   : > { %v365_v30 = vrot.slane %v364_v28, 2  ;;  %305 = vst.msk [vmem:[#allocation2 + $0x2] sm:$0x3] %vm304_vm7, %v302_v29  ;;  %vm616_vm7 = vcmask 1045504  }
  0xab   : > { %368 = vst.msk [vmem:[#allocation2 + $0x6] sm:$0x3] %vm367_vm8, %v365_v30  ;;  %vm751_vm8 = vcmask 941056  }
  0xac   : > { %v307_v34 = vpop.permute.xlu0 %306 }
  0xad   : > { %310 = vst.msk [vmem:[#allocation2 + $0x2] sm:$0x3] %vm309_vm9, %v307_v34  ;;  %vm511_vm9 = vcmask 850944  }
  0xb4   : > { %v369_v38 = vld [vmem:[#allocation2] sm:$0xff] }
  0xb5   : > { %v372_v39 = vcombine.high %v369_v38, %v369_v38  ;;  %v2409_v40 = vrot.slane %v369_v38, %v2406_v37  ;;  %v391_v41 = vcombine.low %v369_v38, %v369_v38 }
  0xb7   : > { %v2412_v42 = vrot.slane %v372_v39, %v2406_v37  ;;  %733 = vrot.lane.b32.xlu0 %v2409_v40, %s3378_s15  ;;  %v412_v43 = vcombine.low %v2409_v40, %v2409_v40  ;;  %v2419_v44 = vrot.slane %v391_v41, %v2406_v37  ;;  %v2424_v46 = vcombine.high %v2409_v40, %v2409_v40  ;;  %s3382_s15 = smov 117  }
  0xb8   : > { %v2516_v7 = vpack.i.bf16 %v855_v6, %v2409_v40 }
  0xb9   : > { %3409 = vst [vmem:[#allocation9_spill] sm:$0xff] %v2419_v44  ;;  %v1808_v45 = vpack.i.bf16 %v412_v43, %v2412_v42  ;;  %v1818_v47 = vpack.i.bf16 %v412_v43, %v2419_v44  ;;  %v1793_v48 = vpack.i.bf16 %v2412_v42, %v2424_v46  ;;  %v1798_v49 = vpack.i.bf16 %v2419_v44, %v2424_v46 }
  0xba   : > { %v2446_v50 = vpack.i.bf16 %v2424_v46, %v2409_v40  ;;  %v2458_v51 = vpack.i.bf16 %v2409_v40, %v412_v43  ;;  %v399_v52 = vcombine.high %v2419_v44, %v2419_v44  ;;  %v413_v54 = vcombine.low %v2412_v42, %v2412_v42 }
  0xbb   : > { %781 = vrot.lane.b32.xlu0 %v2409_v40, %s3375_s19  ;;  %1809 = vrot.lane.b32.xlu1 %v1808_v45, %s2266_s20  ;;  %s2274_s19 = smov 122   ;;  %v2473_v56 = vcombine.high %v2412_v42, %v2412_v42  ;;  %v426_v57 = vcombine.low %v2419_v44, %v2419_v44  ;;  %v1973_v62 = vpack.i.bf16 %v808_v61, %v2424_v46 }
  0xbc   : > { %3410 = vst [vmem:[#allocation10_spill] sm:$0xff] %v2458_v51  ;;  %v1883_v53 = vpack.i.bf16 %v2409_v40, %v399_v52  ;;  %v1903_v55 = vpack.i.bf16 %v413_v54, %v2409_v40  ;;  %v1953_v4 = vpack.i.bf16 %v2499_v2, %v2419_v44  ;;  %v2008_v5 = vpack.i.bf16 %v2412_v42, %v413_v54 }
  0xbd   : > { %v1893_v58 = vpack.i.bf16 %v2409_v40, %v2473_v56  ;;  %v1913_v59 = vpack.i.bf16 %v426_v57, %v2409_v40  ;;  %v1998_v3 = vpack.i.bf16 %v2473_v56, %v2412_v42  ;;  %v2028_v8 = vpack.i.bf16 %v801_v1, %v399_v52 }
  0xbf   : > { %1819 = vrot.lane.b32.xlu1 %v1818_v47, %s3379_s26  ;;  %1794 = vrot.lane.b32.xlu0 %v1793_v48, %s2268_s9  ;;  %s3383_s26 = smov 104  }
  0xc3   : > { %1829 = vrot.lane.b32.xlu1 %v1793_v48, %s2269_s11  ;;  %1799 = vrot.lane.b32.xlu0 %v1798_v49, %s2270_s18 }
  0xc7   : > { %1839 = vrot.lane.b32.xlu1 %v1793_v48, %s2271_s17  ;;  %1804 = vrot.lane.b32.xlu0 %v1798_v49, %s2272_s16 }
  0xcb   : > { %1859 = vrot.lane.b32.xlu1 %v1818_v47, %s3380_s10  ;;  %1814 = vrot.lane.b32.xlu0 %v1808_v45, %s2274_s19  ;;  %s3384_s10 = smov 113  }
  0xcf   : > { %1864 = vrot.lane.b32.xlu1 %v1818_v47, %s3381_s28  ;;  %1824 = vrot.lane.b32.xlu0 %v1818_v47, %s2262_s14  ;;  %s2279_s28 = smov 103  }
  0xd3   : > { %1869 = vrot.lane.b32.xlu1 %v2446_v50, %s3382_s15  ;;  %1834 = vrot.lane.b32.xlu0 %v1798_v49, %s3383_s26  ;;  %s2280_s15 = smov 115   ;;  %s2281_s26 = smov 99  }
  0xd7   : > { %1874 = vrot.lane.b32.xlu1 %v2446_v50, %s3384_s10  ;;  %1844 = vrot.lane.b32.xlu0 %v1798_v49, %s2257_s29  ;;  %s2282_s10 = smov 118  }
  0xdb   : > { %757 = vrot.lane.b32.xlu1 %v2424_v46, %s2261_s12  ;;  %1849 = vrot.lane.b32.xlu0 %v1808_v45, %s2279_s28 }
  0xdf   : > { %1879 = vrot.lane.b32.xlu1 %v2458_v51, %s2280_s15  ;;  %1854 = vrot.lane.b32.xlu0 %v1808_v45, %s2281_s26 }
  0xe3   : > { %1884 = vrot.lane.b32.xlu1 %v1883_v53, %s2270_s18  ;;  %709 = vrot.lane.b32.xlu0 %v2424_v46, %s2282_s10  ;;  %s3411_s18 = smov 125  }
  0xe7   : > { %1889 = vrot.lane.b32.xlu1 %v1883_v53, %s2272_s16  ;;  %1904 = vrot.lane.b32.xlu0 %v1903_v55, %s2274_s19  ;;  %s3412_s16 = smov 104   ;;  %s2283_s19 = smov 91  }
  0xeb   : > { %1894 = vrot.lane.b32.xlu1 %v1893_v58, %s2268_s9  ;;  %1914 = vrot.lane.b32.xlu0 %v1913_v59, %s2262_s14  ;;  %s2285_s9 = smov 111  }
  0xef   : > { %1919 = vrot.lane.b32.xlu0 %v1893_v58, %s2269_s11  ;;  %1899 = vrot.lane.b32.xlu1 %v1903_v55, %s2266_s20  ;;  %s3413_s20 = smov 102   ;;  %s2287_s11 = smov 90  }
  0xf3   : > { %1929 = vrot.lane.b32.xlu0 %v1893_v58, %s2271_s17  ;;  %1909 = vrot.lane.b32.xlu1 %v1913_v59, %s3411_s18  ;;  %s3414_s17 = smov 98   ;;  %s3417_s18 = smov 113  }
  0xf7   : > { %745 = vrot.lane.b32.xlu0 %v2419_v44, %s2280_s15  ;;  %1924 = vrot.lane.b32.xlu1 %v1883_v53, %s3412_s16  ;;  %s2284_s15 = smov 92   ;;  %s2288_s16 = smov 95  }
  0xfb   : > { %1974 = vrot.lane.b32.xlu0 %v1973_v62, %s2283_s19  ;;  %1934 = vrot.lane.b32.xlu1 %v1883_v53, %s2257_s29 }
  0xff   : > { %1984 = vrot.lane.b32.xlu0 %v1913_v59, %s3413_s20  ;;  %1939 = vrot.lane.b32.xlu1 %v1903_v55, %s2279_s28  ;;  %s2286_s28 = smov 94   ;;  %s3419_s20 = smov 117  }
 0x103   : > { %1989 = vrot.lane.b32.xlu0 %v1913_v59, %s3414_s17  ;;  %1944 = vrot.lane.b32.xlu1 %v1903_v55, %s2281_s26  ;;  %s3416_s26 = smov 116   ;;  %s3420_s17 = smov 112  }
 0x107   : > { %1994 = vrot.lane.b32.xlu0 %v2458_v51, %s2284_s15  ;;  %1949 = vrot.lane.b32.xlu1 %v2458_v51, %s2285_s9 }
 0x10b   : > { %1999 = vrot.lane.b32.xlu0 %v1998_v3, %s2282_s10  ;;  %1954 = vrot.lane.b32.xlu1 %v1953_v4, %s2285_s9  ;;  %s3418_s10 = smov 93   ;;  %s2289_s9 = smov 89  }
 0x10f   : > { %2004 = vrot.lane.b32.xlu0 %v1998_v3, %s2261_s12  ;;  %1959 = vrot.lane.b32.xlu1 %v2446_v50, %s2286_s28 }
 0x113   : > { %2009 = vrot.lane.b32.xlu0 %v2008_v5, %s3416_s26  ;;  %1964 = vrot.lane.b32.xlu1 %v2446_v50, %s2287_s11  ;;  %s2293_s26 = smov 88  }
 0x117   : > { %769 = vrot.lane.b32.xlu0 %v399_v52, %s3417_s18  ;;  %1969 = vrot.lane.b32.xlu1 %v1973_v62, %s2288_s16  ;;  %s2298_s18 = smov 30  }
 0x11b   : > { %2019 = vrot.lane.b32.xlu0 %v1998_v3, %s2288_s16  ;;  %1979 = vrot.lane.b32.xlu1 %v2516_v7, %s3418_s10  ;;  %s2299_s16 = smov 65  }
 0x11f   : > { %2024 = vrot.lane.b32.xlu0 %v1998_v3, %s2283_s19  ;;  %721 = vrot.lane.b32.xlu1 %v399_v52, %s3419_s20  ;;  %s2290_s19 = smov 82   ;;  %s2300_s20 = smov 58  }
 0x123   : > { %2029 = vrot.lane.b32.xlu0 %v2028_v8, %s2286_s28  ;;  %2014 = vrot.lane.b32.xlu1 %v2008_v5, %s3420_s17  ;;  %s2291_s28 = smov 36   ;;  %s3457_s17 = smov 72  }
 0x127   : > { %2044 = vrot.lane.b32.xlu0 %v2008_v5, %s2289_s9  ;;  %2034 = vrot.lane.b32.xlu1 %v2008_v5, %s3418_s10 }
 0x129   : > { %v2525_v9 = vpop.permute.xlu0 %733 }
 0x12b   : > { %2039 = vrot.lane.b32.xlu1 %v2028_v8, %s2287_s11  ;;  %s2297_s11 = smov 37  }
 0x12d   : > { %v2527_v10 = vpop.permute.xlu0 %781  ;;  %v2529_v11 = vpop.permute.xlu1 %1809 }
 0x12e   : > { %v3397_v41 = vunpack.i.l.bf16 %v2529_v11 }
 0x131   : > { %v2531_v12 = vpop.permute.xlu1 %1819  ;;  %v2533_v13 = vpop.permute.xlu0 %1794 }
 0x132   : > { %v2568_v30 = vunpack.i.h.bf16 %v2533_v13  ;;  %v3398_v31 = vunpack.i.l.bf16 %v2533_v13  ;;  %v2572_v32 = vunpack.i.h.bf16 %v2531_v12  ;;  %v3395_v33 = vunpack.i.l.bf16 %v2531_v12 }
 0x133   : > { %v3421_v2 = vunpack.i.l.bf16 %v2533_v13 }
 0x134   : > { %v447_v43 = vsel %vm445_vm10, %v3398_v31, %v2568_v30  ;;  %v2594_v49 = vsel %vm433_vm1, %v3395_v33, %v2572_v32 }
 0x135   : > { %v2535_v14 = vpop.permute.xlu1 %1829  ;;  %v2537_v15 = vpop.permute.xlu0 %1799 }
 0x136   : > { %v1801_v34 = vunpack.i.l.bf16 %v2537_v15  ;;  %v3387_v35 = vunpack.i.h.bf16 %v2535_v14  ;;  %v3388_v36 = vunpack.i.l.bf16 %v2535_v14 }
 0x138   : > { %v692_v45 = vsel %vm608_vm12, %v2473_v56, %v1801_v34  ;;  %v2605_v55 = vsel %vm496_vm11, %v3388_v36, %v3387_v35  ;;  %v1802_v56 = vunpack.i.h.bf16 %v2537_v15 }
 0x139   : > { %v2539_v16 = vpop.permute.xlu1 %1839  ;;  %v2541_v17 = vpop.permute.xlu0 %1804  ;;  %v2618_v1 = vsel %vm612_vm2, %v692_v45, %v3397_v41 }
 0x13a   : > { %v3385_v47 = vunpack.i.h.bf16 %v2539_v16  ;;  %v3386_v48 = vunpack.i.l.bf16 %v2539_v16  ;;  %v1807_v61 = vunpack.i.h.bf16 %v2541_v17  ;;  %v3404_v4 = vunpack.i.l.bf16 %v2541_v17 }
 0x13c   : > { %v2625_v3 = vsel %vm556_vm13, %v3386_v48, %v3385_v47 }
 0x13d   : > { %v2543_v18 = vpop.permute.xlu1 %1859  ;;  %v2545_v19 = vpop.permute.xlu0 %1814 }
 0x13e   : > { %v3392_v50 = vunpack.i.h.bf16 %v2543_v18  ;;  %v3391_v52 = vunpack.i.l.bf16 %v2543_v18  ;;  %v1817_v5 = vunpack.i.h.bf16 %v2545_v19 }
 0x140   : > { %v2634_v8 = vsel %vm541_vm14, %v3391_v52, %v3392_v50 }
 0x141   : > { %v2547_v20 = vpop.permute.xlu1 %1864  ;;  %v2549_v21 = vpop.permute.xlu0 %1824 }
 0x142   : > { %v3394_v53 = vunpack.i.h.bf16 %v2547_v20  ;;  %v3393_v54 = vunpack.i.l.bf16 %v2547_v20  ;;  %v2609_v57 = vunpack.i.h.bf16 %v2549_v21  ;;  %v3396_v58 = vunpack.i.l.bf16 %v2549_v21 }
 0x144   : > { %v2642_v45 = vsel %vm601_vm15, %v3393_v54, %v3394_v53  ;;  %v483_v52 = vsel %vm481_vm0, %v3396_v58, %v2609_v57 }
 0x145   : > { %v2551_v22 = vpop.permute.xlu1 %1869  ;;  %v2553_v23 = vpop.permute.xlu0 %1834 }
 0x149   : > { %v2555_v24 = vpop.permute.xlu1 %1874  ;;  %v2557_v25 = vpop.permute.xlu0 %1844 }
 0x14d   : > { %v2559_v26 = vpop.permute.xlu1 %757  ;;  %v2561_v27 = vpop.permute.xlu0 %1849 }
 0x151   : > { %v2563_v28 = vpop.permute.xlu1 %1879  ;;  %v2565_v29 = vpop.permute.xlu0 %1854 }
 0x155   : > { %v1885_v37 = vpop.permute.xlu1 %1884  ;;  %v2578_v38 = vpop.permute.xlu0 %709 }
 0x156   : > { %v1887_v6 = vunpack.i.h.bf16 %v1885_v37 }
 0x158   : > { %v650_v33 = vsel %vm406_vm3, %v1887_v6, %v1801_v34 }
 0x159   : > { %v1890_v59 = vpop.permute.xlu1 %1889  ;;  %v1905_v60 = vpop.permute.xlu0 %1904 }
 0x15a   : > { %v2613_v62 = vunpack.i.h.bf16 %v1890_v59  ;;  %v1891_v63 = vunpack.i.l.bf16 %v1890_v59  ;;  %v1886_v59 = vunpack.i.l.bf16 %v1885_v37  ;;  %v2645_v48 = vunpack.i.h.bf16 %v1905_v60 }
 0x15b   : > { %v1906_v35 = vunpack.i.l.bf16 %v1905_v60  ;;  %v611_v60 = vsel %vm608_vm12, %v2412_v42, %v1887_v6 }
 0x15c   : > { %v459_v37 = vsel %vm457_vm4, %v1891_v63, %v2613_v62  ;;  %v407_v58 = vsel %vm406_vm3, %v1802_v56, %v1886_v59  ;;  %v408_v50 = vsel %vm406_vm3, %v1886_v59, %v1887_v6  ;;  %v622_v54 = vsel %vm608_vm12, %v2568_v30, %v2613_v62 }
 0x15d   : > { %v2647_v36 = vpop.permute.xlu1 %1894  ;;  %v2649_v0 = vpop.permute.xlu0 %1914  ;;  %v471_v34 = vsel %vm469_vm5, %v1906_v35, %v2645_v48  ;;  %v621_v56 = vsel %vm608_vm12, %v447_v43, %v459_v37  ;;  %v691_v59 = vsel %vm608_vm12, %v2412_v42, %v650_v33  ;;  %v625_v51 = vsel %vm612_vm2, %v622_v54, %v2645_v48 }
 0x15e   : > { %v1896_v53 = vunpack.i.l.bf16 %v2647_v36  ;;  %v1897_v39 = vunpack.i.h.bf16 %v2647_v36  ;;  %v610_v43 = vsel %vm608_vm12, %v2424_v46, %v408_v50  ;;  %v609_v42 = vsel %vm608_vm12, %v2409_v40, %v407_v58 }
 0x15f   : > { %v458_v33 = vsel %vm457_vm4, %v1807_v61, %v1891_v63  ;;  %v470_v37 = vsel %vm469_vm5, %v1817_v5, %v1906_v35  ;;  %v624_v13 = vsel %vm612_vm2, %v621_v56, %v471_v34  ;;  %v3423_v50 = vunpack.i.l.bf16 %v2545_v19 }
 0x160   : > { %v698_v15 = vsel %vm608_vm12, %v1896_v53, %v3404_v4  ;;  %v446_v44 = vsel %vm445_vm10, %v1897_v39, %v3421_v2  ;;  %v1917_v4 = vunpack.i.h.bf16 %v2649_v0  ;;  %v3422_v2 = vunpack.i.l.bf16 %v2529_v11 }
 0x161   : > { %v2675_v47 = vpop.permute.xlu0 %1919  ;;  %v1900_v31 = vpop.permute.xlu1 %1899  ;;  %v700_v35 = vsel %vm612_vm2, %v698_v15, %v3423_v50  ;;  %v1916_v58 = vunpack.i.l.bf16 %v2649_v0  ;;  %v628_v63 = vsel %vm616_vm7, %v625_v51, %v2609_v57  ;;  %v620_v5 = vsel %vm608_vm12, %v446_v44, %v458_v33 }
 0x162   : > { %v1902_v41 = vunpack.i.h.bf16 %v1900_v31  ;;  %v1901_v6 = vunpack.i.l.bf16 %v1900_v31  ;;  %v3424_v34 = vunpack.i.h.bf16 %v2529_v11  ;;  %v2721_v50 = vsel %vm616_vm7, %v624_v13, %v483_v52 }
 0x163   : > { %v702_v44 = vsel %vm616_vm7, %v700_v35, %v1916_v58  ;;  %vm571_vm3 = vcmask 818176   ;;  %v3425_v52 = vunpack.i.l.bf16 %v2563_v28  ;;  %v3426_v35 = vunpack.i.l.bf16 %v2531_v12 }
 0x164   : > { %v655_v31 = vsel %vm420_vm6, %v1902_v41, %v3422_v2  ;;  %v422_v39 = vsel %vm420_vm6, %v1901_v6, %v1902_v41  ;;  %v615_v40 = vsel %vm612_vm2, %v611_v60, %v1902_v41  ;;  %v421_v56 = vsel %vm420_vm6, %v3424_v34, %v1901_v6 }
 0x165   : > { %v2702_v54 = vpop.permute.xlu0 %1929  ;;  %v1910_v46 = vpop.permute.xlu1 %1909  ;;  %v619_v41 = vsel %vm616_vm7, %v615_v40, %v2572_v32  ;;  %v614_v60 = vsel %vm612_vm2, %v610_v43, %v422_v39  ;;  %v693_v51 = vsel %vm612_vm2, %v691_v59, %v655_v31  ;;  %v613_v59 = vsel %vm612_vm2, %v609_v42, %v421_v56 }
 0x166   : > { %v1911_v61 = vunpack.i.l.bf16 %v1910_v46  ;;  %v1912_v2 = vunpack.i.h.bf16 %v1910_v46  ;;  %v1115_v11 = vpack.c.bf16 %v628_v63, %v619_v41  ;;  %v618_v46 = vsel %vm616_vm7, %v614_v60, %v2594_v49 }
 0x167   : > { %v1114_v39 = vpack.c.bf16 %v2721_v50, %v618_v46  ;;  %v623_v31 = vsel %vm612_vm2, %v620_v5, %v470_v37  ;;  %vm526_vm6 = vcmask 842752   ;;  %v1857_v63 = vunpack.i.h.bf16 %v2565_v29 }
 0x168   : > { %v660_v15 = vsel %vm433_vm1, %v2572_v32, %v1911_v61  ;;  %v696_v43 = vsel %vm616_vm7, %v2618_v1, %v1911_v61  ;;  %1670 = vmatpush3.bf16.msra.mxu1 %v1115_v11  ;;  %v434_v61 = vsel %vm433_vm1, %v1912_v2, %v3426_v35  ;;  %v3427_v41 = vunpack.i.l.bf16 %v2549_v21 }
 0x169   : > { %v746_v6 = vpop.permute.xlu0 %745  ;;  %v1925_v33 = vpop.permute.xlu1 %1924  ;;  %v695_v32 = vsel %vm616_vm7, %v693_v51, %v660_v15  ;;  %v2740_v40 = vpack.i.bf16 %v702_v44, %v696_v43  ;;  %1143 = vmatprep.subr.bf16.mxu0 %v1114_v39  ;;  %v617_v37 = vsel %vm616_vm7, %v613_v59, %v434_v61  ;;  %v665_v5 = vsel %vm445_vm10, %v2568_v30, %v1896_v53 }
 0x16a   : > { %v2735_v13 = vsel %vm751_vm8, %v746_v6, %v3425_v52  ;;  %v1927_v49 = vunpack.i.h.bf16 %v1925_v33  ;;  %v2742_v1 = vpack.i.bf16 %v695_v32, %v618_v46  ;;  %v1926_v34 = vunpack.i.l.bf16 %v1925_v33 }
 0x16b   : > { %v482_v42 = vsel %vm481_vm0, %v1917_v4, %v3427_v41  ;;  %v1922_v56 = vunpack.i.h.bf16 %v2675_v47  ;;  %v1921_v12 = vunpack.i.l.bf16 %v2675_v47  ;;  %2049 = vrot.lane.b32.xlu0 %v2740_v40, %s2290_s19  ;;  %vm586_vm1 = vcmask 809984  }
 0x16c   : > { %2069 = vrot.lane.b32.xlu1 %v2742_v1, %s2290_s19  ;;  %v626_v21 = vsel %vm616_vm7, %v623_v31, %v482_v42  ;;  %v1856_v36 = vunpack.i.l.bf16 %v2565_v29  ;;  %v1932_v30 = vunpack.i.h.bf16 %v2702_v54  ;;  %v1931_v53 = vunpack.i.l.bf16 %v2702_v54 }
 0x16d   : > { %v2763_v4 = vpop.permute.xlu0 %1974  ;;  %v1935_v2 = vpop.permute.xlu1 %1934  ;;  %v1113_v47 = vpack.c.bf16 %v626_v21, %v617_v37  ;;  %v3428_v60 = vmov 0.0   ;;  %v3429_v15 = vunpack.i.l.bf16 %v2541_v17  ;;  %v3430_v51 = vunpack.i.l.bf16 %v2545_v19 }
 0x16e   : > { %1671 = vmatprep.subr.bf16.mxu1 %v3428_v60  ;;  %v3431_v6 = vunpack.i.l.bf16 %v2553_v23  ;;  %v2782_v46 = vpack.i.bf16 %v626_v21, %v617_v37  ;;  %v3432_v17 = vunpack.i.h.bf16 %v2553_v23  ;;  %v1936_v19 = vunpack.i.l.bf16 %v1935_v2 }
 0x16f   : > { %v670_v44 = vsel %vm457_vm4, %v2613_v62, %v3429_v15  ;;  %v2777_v11 = vsel %vm469_vm5, %v2645_v48, %v3430_v51  ;;  %1144 = vmatpush1.bf16.msra.mxu0 %v1113_v47  ;;  %v1937_v62 = vunpack.i.h.bf16 %v1935_v2  ;;  %v3433_v32 = vunpack.i.l.bf16 %v2535_v14 }
 0x170   : > { %v514_v33 = vsel %vm511_vm9, %v1927_v49, %v3431_v6  ;;  %v2785_v54 = vsel %vm608_vm12, %v665_v5, %v670_v44  ;;  %v512_v43 = vsel %vm511_vm9, %v3432_v17, %v1926_v34  ;;  %v3434_v52 = vunpack.i.h.bf16 %v2535_v14  ;;  %2079 = vrot.lane.b32.xlu1 %v2782_v46, %s2290_s19 }
 0x171   : > { %v497_v48 = vsel %vm496_vm11, %v1922_v56, %v3433_v32  ;;  %v3435_v59 = vmov %v3431_v6  ;;  %v513_v35 = vsel %vm511_vm9, %v1926_v34, %v1927_v49  ;;  %v1985_v61 = vpop.permute.xlu0 %1984  ;;  %v1940_v41 = vpop.permute.xlu1 %1939  ;;  %v3436_v42 = vunpack.i.l.bf16 %v2539_v16 }
 0x172   : > { %v499_v39 = vsel %vm496_vm11, %v3434_v52, %v1921_v12  ;;  %v703_v31 = vsel %vm608_vm12, %v1921_v12, %v3435_v59  ;;  %v3437_v5 = vunpack.i.h.bf16 %v2539_v16  ;;  %v3438_v56 = vunpack.i.l.bf16 %v2557_v25 }
 0x173   : > { %v557_v37 = vsel %vm556_vm13, %v1932_v30, %v3436_v42  ;;  %v631_v12 = vsel %vm608_vm12, %v499_v39, %v514_v33  ;;  %v629_v49 = vsel %vm608_vm12, %v497_v48, %v512_v43  ;;  %v1986_v34 = vunpack.i.l.bf16 %v1985_v61 }
 0x174   : > { %v559_v14 = vsel %vm556_vm13, %v3437_v5, %v1931_v53  ;;  %v706_v23 = vsel %vm608_vm12, %v1931_v53, %v3438_v56  ;;  %v1942_v21 = vunpack.i.h.bf16 %v1940_v41  ;;  %v1941_v2 = vunpack.i.l.bf16 %v1940_v41 }
 0x175   : > { %v630_v47 = vsel %vm608_vm12, %v2605_v55, %v513_v35  ;;  %v3439_v30 = vmov %v3438_v56  ;;  %v3440_v15 = vunpack.i.h.bf16 %v2557_v25  ;;  %v573_v53 = vsel %vm571_vm3, %v1936_v19, %v1937_v62  ;;  %v1990_v17 = vpop.permute.xlu0 %1989  ;;  %v1945_v43 = vpop.permute.xlu1 %1944 }
 0x176   : > { %v574_v16 = vsel %vm571_vm3, %v1937_v62, %v3439_v30  ;;  %v1987_v51 = vunpack.i.h.bf16 %v1985_v61  ;;  %v3441_v6 = vunpack.i.l.bf16 %v2561_v27  ;;  %v707_v48 = vsel %vm612_vm2, %v706_v23, %v1856_v36 }
 0x177   : > { %v572_v44 = vsel %vm571_vm3, %v3440_v15, %v1936_v19  ;;  %v528_v52 = vsel %vm526_vm6, %v1941_v2, %v1942_v21  ;;  %v1991_v25 = vunpack.i.l.bf16 %v1990_v17  ;;  %v1947_v39 = vunpack.i.h.bf16 %v1945_v43 }
 0x178   : > { %v529_v33 = vsel %vm526_vm6, %v1942_v21, %v3441_v6  ;;  %v3442_v32 = vmov %v3441_v6  ;;  %v1946_v59 = vunpack.i.l.bf16 %v1945_v43  ;;  %v640_v62 = vsel %vm608_vm12, %v559_v14, %v574_v16 }
 0x179   : > { %v704_v55 = vsel %vm612_vm2, %v703_v31, %v3442_v32  ;;  %v638_v19 = vsel %vm608_vm12, %v557_v37, %v572_v44  ;;  %v639_v35 = vsel %vm608_vm12, %v2625_v3, %v573_v53  ;;  %v3443_v61 = vunpack.i.h.bf16 %v2543_v18  ;;  %v2843_v21 = vpop.permute.xlu0 %1994  ;;  %v2845_v37 = vpop.permute.xlu1 %1949 }
 0x17a   : > { %v1992_v42 = vunpack.i.h.bf16 %v1990_v17  ;;  %v3444_v31 = vunpack.i.h.bf16 %v2547_v20  ;;  %v589_v56 = vsel %vm586_vm1, %v1947_v39, %v1856_v36  ;;  %v634_v23 = vsel %vm612_vm2, %v631_v12, %v529_v33 }
 0x17b   : > { %v544_v41 = vsel %vm541_vm14, %v3443_v61, %v1986_v34  ;;  %v588_v14 = vsel %vm586_vm1, %v1946_v59, %v1947_v39  ;;  %v708_v3 = vsel %vm616_vm7, %v707_v48, %v1991_v25  ;;  %v643_v30 = vsel %vm612_vm2, %v640_v62, %v589_v56 }
 0x17c   : > { %v604_v5 = vsel %vm601_vm15, %v3444_v31, %v1991_v25  ;;  %v633_v16 = vsel %vm612_vm2, %v630_v47, %v528_v52  ;;  %v3445_v15 = vunpack.i.l.bf16 %v2543_v18  ;;  %v3446_v36 = vunpack.i.h.bf16 %v2561_v27 }
 0x17d   : > { %v587_v53 = vsel %vm586_vm1, %v1857_v63, %v1946_v59  ;;  %v705_v6 = vsel %vm616_vm7, %v704_v55, %v1986_v34  ;;  %v2861_v17 = vsel %vm616_vm7, %v634_v23, %v544_v41  ;;  %v646_v47 = vsel %vm616_vm7, %v643_v30, %v604_v5  ;;  %v2876_v34 = vpop.permute.xlu0 %1999  ;;  %v1955_v43 = vpop.permute.xlu1 %1954 }
 0x17e   : > { %v542_v44 = vsel %vm541_vm14, %v1987_v51, %v3445_v15  ;;  %v527_v12 = vsel %vm526_vm6, %v3446_v36, %v1941_v2  ;;  %v2053_v33 = vpack.i.bf16 %v708_v3, %v705_v6  ;;  %v642_v18 = vsel %vm612_vm2, %v639_v35, %v588_v14 }
 0x17f   : > { %v3447_v51 = vunpack.i.l.bf16 %v2547_v20  ;;  %v1118_v2 = vpack.c.bf16 %v646_v47, %v2861_v17  ;;  %v645_v29 = vsel %vm616_vm7, %v642_v18, %v2642_v45  ;;  %v2873_v63 = vsel %vm616_vm7, %v633_v16, %v2634_v8 }
 0x180   : > { %2054 = vrot.lane.b32.xlu0 %v2053_v33, %s2290_s19  ;;  %v2878_v32 = vpack.i.bf16 %v646_v47, %v645_v29  ;;  %v1117_v20 = vpack.c.bf16 %v645_v29, %v2873_v63  ;;  %v632_v55 = vsel %vm612_vm2, %v629_v49, %v527_v12  ;;  %v641_v48 = vsel %vm612_vm2, %v638_v19, %v587_v53 }
 0x181   : > { %v602_v27 = vsel %vm601_vm15, %v1992_v42, %v3447_v51  ;;  %v1952_v52 = vunpack.i.h.bf16 %v2845_v37  ;;  %v1951_v45 = vunpack.i.l.bf16 %v2845_v37  ;;  %v1957_v25 = vunpack.i.h.bf16 %v1955_v43  ;;  %1672 = vmatpush3.bf16.msra.mxu1 %v1118_v2 }
 0x182   : > { %v1956_v8 = vunpack.i.l.bf16 %v1955_v43  ;;  %vm818_vm10 = vcmask 908288   ;;  %2089 = vrot.lane.b32.xlu1 %v2878_v32, %s2290_s19  ;;  %1145 = vmatprep.subr.bf16.mxu0 %v1117_v20  ;;  %v644_v39 = vsel %vm616_vm7, %v641_v48, %v602_v27  ;;  %v699_v49 = vsel %vm612_vm2, %v2785_v54, %v2777_v11 }
 0x183   : > { %v680_v59 = vsel %vm481_vm0, %v2609_v57, %v1916_v58  ;;  %v2903_v19 = vsel %vm818_vm10, %v1952_v52, %v1957_v25  ;;  %v635_v35 = vsel %vm616_vm7, %v632_v55, %v542_v44  ;;  %1673 = vmatprep.subr.bf16.mxu1 %v3428_v60  ;;  %v2002_v11 = vunpack.i.h.bf16 %v2876_v34  ;;  %v2911_v57 = vpop.permute.xlu0 %2004  ;;  %v2913_v58 = vpop.permute.xlu1 %1959 }
 0x184   : > { %v2898_v62 = vsel %vm818_vm10, %v1956_v8, %v1951_v45  ;;  %v2001_v0 = vunpack.i.l.bf16 %v2876_v34  ;;  %v1116_v54 = vpack.c.bf16 %v644_v39, %v635_v35  ;;  %2059 = vrot.lane.b32.xlu0 %v2740_v40, %s2291_s28  ;;  %v2093_v61 = vpack.i.bf16 %v644_v39, %v635_v35 }
 0x185   : > { %vm715_vm11 = vcmask 965632   ;;  %v701_v41 = vsel %vm616_vm7, %v699_v49, %v680_v59  ;;  %v1872_v42 = vunpack.i.h.bf16 %v2551_v22  ;;  %v1871_v31 = vunpack.i.l.bf16 %v2551_v22 }
 0x186   : > { %1146 = vmatpush1.bf16.msra.mxu0 %v1116_v54  ;;  %2094 = vrot.lane.b32.xlu1 %v2093_v61, %s2290_s19  ;;  %vm727_vm13 = vcmask 957440   ;;  %v1882_v5 = vunpack.i.h.bf16 %v2563_v28  ;;  %v717_v40 = vsel %vm715_vm11, %v2001_v0, %v2002_v11  ;;  %vm739_vm14 = vcmask 949248  }
 0x187   : > { %v2010_v56 = vpop.permute.xlu0 %2009  ;;  %v2922_v23 = vpop.permute.xlu1 %1964  ;;  %v2103_v14 = vpack.i.bf16 %v701_v41, %v2721_v50  ;;  %v2006_v3 = vunpack.i.l.bf16 %v2911_v57  ;;  %vm775_vm15 = vcmask 924672   ;;  %v948_v16 = vsel %vm608_vm12, %v2002_v11, %v1872_v42 }
 0x188   : > { %2064 = vrot.lane.b32.xlu0 %v2053_v33, %s2291_s28  ;;  %v2012_v30 = vunpack.i.h.bf16 %v2010_v56  ;;  %v2011_v22 = vunpack.i.l.bf16 %v2010_v56  ;;  %vm763_vm0 = vcmask 932864   ;;  %v729_v15 = vsel %vm727_vm13, %v1871_v31, %v1872_v42 }
 0x189   : > { %v1876_v44 = vunpack.i.l.bf16 %v2555_v24  ;;  %v947_v50 = vsel %vm608_vm12, %v717_v40, %v729_v15  ;;  %v3448_v53 = vunpack.i.l.bf16 %v2563_v28  ;;  %v764_v27 = vsel %vm763_vm0, %v2559_v26, %v2006_v3 }
 0x18a   : > { %2104 = vrot.lane.b32.xlu1 %v2103_v14, %s2291_s28  ;;  %v741_v36 = vsel %vm739_vm14, %v2011_v22, %v2012_v30  ;;  %v951_v12 = vsel %vm612_vm2, %v948_v16, %v2012_v30  ;;  %v2083_v34 = vpack.i.bf16 %v2861_v17, %v2873_v63  ;;  %v1877_v20 = vunpack.i.h.bf16 %v2555_v24 }
 0x18b   : > { %v753_v6 = vsel %vm751_vm8, %v3448_v53, %v1882_v5  ;;  %v770_v33 = vpop.permute.xlu0 %769  ;;  %v2937_v47 = vpop.permute.xlu1 %1969  ;;  %v950_v18 = vsel %vm612_vm2, %v947_v50, %v741_v36  ;;  %v2941_v51 = vsel %vm616_vm7, %v951_v12, %v1882_v5  ;;  %v716_v55 = vsel %vm715_vm11, %v2578_v38, %v2001_v0  ;;  %v3451_v50 = vld [vmem:[#allocation11_spill] sm:$0xff] }
 0x18c   : > { %2074 = vrot.lane.b32.xlu0 %v2103_v14, %s2290_s19  ;;  %v776_v2 = vsel %vm775_vm15, %v770_v33, %v1876_v44  ;;  %v2947_v29 = vsel %vm616_vm7, %v950_v18, %v753_v6  ;;  %v2007_v17 = vunpack.i.h.bf16 %v2911_v57  ;;  %v740_v63 = vsel %vm739_vm14, %v2525_v9, %v2011_v22  ;;  %v1137_v33 = vld [vmem:[%s3366_s2] sm:$0xff] }
 0x18d   : > { %v955_v28 = vsel %vm608_vm12, %v764_v27, %v776_v2  ;;  %vm848_vm4 = vcmask 769024   ;;  %vm833_vm5 = vcmask 777216   ;;  %vm787_vm8 = vcmask 916480  }
 0x18e   : > { %2109 = vrot.lane.b32.xlu1 %v2782_v46, %s2291_s28  ;;  %vm864_vm9 = vcmask 760832   ;;  %v957_v49 = vsel %vm608_vm12, %v2007_v17, %v1877_v20  ;;  %v765_v59 = vsel %vm763_vm0, %v2006_v3, %v2007_v17  ;;  %v777_v35 = vsel %vm775_vm15, %v1876_v44, %v1877_v20  ;;  %v3450_v3 = vld [vmem:[#allocation9_spill] sm:$0xff] }
 0x18f   : > { %v2955_v43 = vpop.permute.xlu1 %1979  ;;  %v2968_v48 = vpop.permute.xlu0 %2019  ;;  %v3405_v11 = vunpack.i.h.bf16 %v2843_v21  ;;  %v2292_v57 = vmov 0   ;;  %v1961_v41 = vunpack.i.l.bf16 %v2913_v58  ;;  %v820_v16 = vsel %vm818_vm10, %v1951_v45, %v1952_v52 }
 0x190   : > { %2084 = vrot.lane.b32.xlu0 %v2083_v34, %s2290_s19  ;;  %v2022_v9 = vunpack.i.h.bf16 %v2968_v48  ;;  %v2021_v25 = vunpack.i.l.bf16 %v2968_v48  ;;  %1175 = vmatprep.mubr.bf16.mxu0 %v2292_v57  ;;  %vm879_vm3 = vcmask 752640   ;;  %vm2294_vm6 = vmmov 0   ;;  %s1656_s19 = sshll.u32 %s2360_s25, 6 }
 0x191   : > { %2138 = vset.pattern.permute.xlu1 %v2292_v57  ;;  %2139 = vset.pattern.permute.xlu0 %v2292_v57  ;;  %vm894_vm1 = vcmask 744448   ;;  %vm909_vm10 = vcmask 736256   ;;  %vm1030_vm11 = vcmask 670720   ;;  %vm924_vm14 = vcmask 728064  }
 0x192   : > { %2119 = vrot.lane.b32.xlu1 %v2878_v32, %s2291_s28  ;;  %v835_v40 = vsel %vm833_vm5, %v2021_v25, %v2022_v9  ;;  %1685 = vmatprep.mubr.msk.bf16.mxu1 %vm2294_vm6, %v3428_v60  ;;  %vm939_vm15 = vcmask 719872   ;;  %vm1249_vm0 = vcmask 64512  }
 0x193   : > { %v722_v26 = vpop.permute.xlu1 %721  ;;  %v3062_v18 = vpop.permute.xlu0 %2024 }
 0x194   : > { %2099 = vrot.lane.b32.xlu0 %v2742_v1, %s2291_s28  ;;  %v728_v46 = vsel %vm727_vm13, %v722_v26, %v1871_v31  ;;  %v3406_v17 = vunpack.i.h.bf16 %v3062_v18  ;;  %vm1087_vm13 = vcmask 293888  }
 0x195   : > { %v946_v32 = vsel %vm608_vm12, %v716_v55, %v728_v46 }
 0x196   : > { %2124 = vrot.lane.b32.xlu1 %v2093_v61, %s2291_s28  ;;  %v949_v1 = vsel %vm612_vm2, %v946_v32, %v740_v63  ;;  %v1962_v61 = vunpack.i.h.bf16 %v2913_v58  ;;  %v2026_v63 = vunpack.i.l.bf16 %v3062_v18 }
 0x197   : > { %v2015_v24 = vpop.permute.xlu1 %2014  ;;  %v2976_v38 = vsel %vm616_vm7, %v949_v1, %v2735_v13  ;;  %v1996_v13 = vunpack.i.l.bf16 %v2843_v21  ;;  %v2030_v27 = vpop.permute.xlu0 %2029  ;;  %v1967_v1 = vunpack.i.h.bf16 %v2922_v23 }
 0x198   : > { %2114 = vrot.lane.b32.xlu0 %v2083_v34, %s2291_s28  ;;  %v2017_v8 = vunpack.i.h.bf16 %v2015_v24  ;;  %v2016_v39 = vunpack.i.l.bf16 %v2015_v24  ;;  %v850_v44 = vsel %vm848_vm4, %v1961_v41, %v1962_v61  ;;  %v1966_v24 = vunpack.i.l.bf16 %v2922_v23  ;;  %s2295_s28 = smov 44  }
 0x199   : > { %v965_v45 = vsel %vm608_vm12, %v835_v40, %v850_v44  ;;  %v881_v53 = vsel %vm879_vm3, %v1996_v13, %v3405_v11  ;;  %v896_v57 = vsel %vm894_vm1, %v2026_v63, %v3406_v17 }
 0x19a   : > { %2129 = vrot.lane.b32.xlu1 %v2516_v7, %s2289_s9  ;;  %v960_v0 = vsel %vm612_vm2, %v957_v49, %v2017_v8  ;;  %v788_v54 = vsel %vm787_vm8, %v2527_v10, %v2016_v39  ;;  %v789_v42 = vsel %vm787_vm8, %v2016_v39, %v2017_v8  ;;  %v3449_v7 = vld [vmem:[#allocation10_spill] sm:$0xff]  ;;  %v956_v10 = vsel %vm608_vm12, %v765_v59, %v777_v35  ;;  %s3458_s9 = smov 86  }
 0x19b   : > { %v2995_v31 = vpop.permute.xlu1 %2034  ;;  %v2999_v5 = vsel %vm616_vm7, %v960_v0, %v2903_v19  ;;  %v959_v19 = vsel %vm612_vm2, %v956_v10, %v789_v42  ;;  %v958_v22 = vsel %vm612_vm2, %v955_v28, %v788_v54  ;;  %v3066_v28 = vpop.permute.xlu0 %2044  ;;  %v1976_v39 = vunpack.i.l.bf16 %v2763_v4 }
 0x19c   : > { %2134 = vrot.lane.b32.xlu0 %v3449_v7, %s2293_s26  ;;  %v2037_v56 = vunpack.i.h.bf16 %v2995_v31  ;;  %v2036_v14 = vunpack.i.l.bf16 %v2995_v31  ;;  %v1133_v30 = vpack.c.bf16 %v2999_v5, %v2941_v51  ;;  %v3035_v37 = vsel %vm616_vm7, %v959_v19, %v820_v16 }
 0x19d   : > { %v3039_v52 = vsel %vm616_vm7, %v958_v22, %v2898_v62  ;;  %v1132_v36 = vpack.c.bf16 %v3035_v37, %v2947_v29  ;;  %v1971_v59 = vunpack.i.l.bf16 %v2937_v47  ;;  %v2032_v35 = vunpack.i.h.bf16 %v2030_v27 }
 0x19e   : > { %871 = vrot.lane.b32.xlu1 %v3450_v3, %s2284_s15  ;;  %v866_v15 = vsel %vm864_vm9, %v2036_v14, %v2037_v56  ;;  %v2031_v0 = vunpack.i.l.bf16 %v2030_v27  ;;  %v1972_v54 = vunpack.i.h.bf16 %v2937_v47  ;;  %v911_v40 = vsel %vm909_vm10, %v1966_v24, %v1967_v1 }
 0x19f   : > { %v968_v62 = vsel %vm612_vm2, %v965_v45, %v866_v15  ;;  %v3064_v2 = vpop.permute.xlu1 %2039  ;;  %v1982_v47 = vunpack.i.h.bf16 %v2955_v43  ;;  %v1981_v19 = vunpack.i.l.bf16 %v2955_v43  ;;  %v3107_v16 = vsel %vm894_vm1, %v1976_v39, %v2026_v63 }
 0x1a0   : > { %931 = vrot.lane.b32.xlu0 %v3450_v3, %s2293_s26  ;;  %v3055_v6 = vsel %vm616_vm7, %v968_v62, %v881_v53  ;;  %v3097_v3 = vsel %vm833_vm5, %v1971_v59, %v2021_v25  ;;  %v3104_v22 = vsel %vm833_vm5, %v2022_v9, %v1972_v54  ;;  %v3117_v25 = vsel %vm848_vm4, %v2031_v0, %v1961_v41 }
 0x1a1   : > { %v3122_v48 = vsel %vm848_vm4, %v1962_v61, %v2032_v35  ;;  %v2047_v9 = vunpack.i.h.bf16 %v3066_v28  ;;  %v2046_v53 = vunpack.i.l.bf16 %v3066_v28  ;;  %v2041_v62 = vunpack.i.l.bf16 %v3064_v2 }
 0x1a2   : > { %877 = vrot.lane.b32.xlu1 %v3451_v50, %s2284_s15  ;;  %v966_v23 = vsel %vm608_vm12, %v3104_v22, %v3122_v48  ;;  %v3452_v29 = vunpack.i.h.bf16 %v2763_v4  ;;  %v3453_v37 = vunpack.i.h.bf16 %v3062_v18  ;;  %v3454_v28 = vunpack.i.h.bf16 %v2843_v21  ;;  %s3456_s15 = smov 107  }
 0x1a3   : > { %v3455_v51 = vpack.c.bf16 %v3039_v52, %v2976_v38  ;;  %v1243_v38 = vld [vmem:[%s3368_s4] sm:$0x3]  ;;  %vm1449_vm4 = vcmask 130048   ;;  %vm1434_vm5 = vcmask 416768  }
 0x1a4   : > { %937 = vrot.lane.b32.xlu0 %v3451_v50, %s2293_s26  ;;  %v3112_v50 = vsel %vm608_vm12, %v896_v57, %v911_v40  ;;  %s2296_s26 = smov 51  }
 0x1a6   : > { %1140 = vperm.xlu1 %2138, %v1137_v33  }
 0x1a8   : > { %1246 = vperm.xlu0 %2139, %v1243_v38  }
 0x1dd   : > { %v2050_v26 = vpop.permute.xlu0 %2049 }
 0x1de   : > { %v2070_v34 = vpop.permute.xlu1 %2069  ;;  %v2051_v42 = vunpack.i.l.bf16 %v2050_v26  ;;  %v2052_v33 = vunpack.i.h.bf16 %v2050_v26 }
 0x1df   : > { %v2072_v7 = vunpack.i.h.bf16 %v2070_v34  ;;  %v2071_v15 = vunpack.i.l.bf16 %v2070_v34 }
 0x1e1   : > { %v1033_v34 = vsel %vm1030_vm11, %v2072_v7, %v2051_v42  ;;  %v1032_v0 = vsel %vm1030_vm11, %v2071_v15, %v2072_v7 }
 0x1e2   : > { %v2080_v20 = vpop.permute.xlu1 %2079 }
 0x1e3   : > { %v2081_v44 = vunpack.i.l.bf16 %v2080_v20  ;;  %v2082_v59 = vunpack.i.h.bf16 %v2080_v20 }
 0x1e5   : > { %v1031_v54 = vsel %vm1030_vm11, %v2081_v44, %v2071_v15 }
 0x1f2   : > { %v3068_v55 = vpop.permute.xlu0 %2054 }
 0x1f3   : > { %v2057_v61 = vunpack.i.h.bf16 %v3068_v55  ;;  %v2056_v26 = vunpack.i.l.bf16 %v3068_v55 }
 0x1f4   : > { %v3070_v46 = vpop.permute.xlu1 %2089 }
 0x1f5   : > { %v2092_v63 = vunpack.i.h.bf16 %v3070_v46  ;;  %v2091_v41 = vunpack.i.l.bf16 %v3070_v46 }
 0x1f6   : > { %v3074_v32 = vpop.permute.xlu0 %2059 }
 0x1f7   : > { %v2062_v46 = vunpack.i.h.bf16 %v3074_v32  ;;  %v1041_v15 = vsel %vm1030_vm11, %v2091_v41, %v2092_v63 }
 0x1f8   : > { %v3080_v49 = vpop.permute.xlu1 %2094 }
 0x1f9   : > { %v2097_v57 = vunpack.i.h.bf16 %v3080_v49  ;;  %v2096_v55 = vunpack.i.l.bf16 %v3080_v49 }
 0x1fa   : > { %v3087_v10 = vpop.permute.xlu0 %2064 }
 0x1fb   : > { %v1040_v49 = vsel %vm1030_vm11, %v2097_v57, %v2091_v41 }
 0x1fc   : > { %v3109_v45 = vpop.permute.xlu1 %2104 }
 0x1fd   : > { %v2107_v44 = vunpack.i.h.bf16 %v3109_v45 }
 0x1fe   : > { %v2075_v27 = vpop.permute.xlu0 %2074 }
 0x1ff   : > { %v2077_v39 = vunpack.i.h.bf16 %v2075_v27  ;;  %v2076_v58 = vunpack.i.l.bf16 %v2075_v27 }
 0x200   : > { %v2110_v35 = vpop.permute.xlu1 %2109 }
 0x201   : > { %v1036_v42 = vsel %vm1030_vm11, %v2077_v39, %v2052_v33  ;;  %v1035_v40 = vsel %vm1030_vm11, %v2076_v58, %v2077_v39  ;;  %v1034_v11 = vsel %vm1030_vm11, %v2082_v59, %v2076_v58  ;;  %v2106_v33 = vunpack.i.l.bf16 %v3109_v45 }
 0x202   : > { %v2085_v27 = vpop.permute.xlu0 %2084  ;;  %v1121_v20 = vpack.c.bf16 %v1036_v42, %v1033_v34  ;;  %v1120_v12 = vpack.c.bf16 %v1035_v40, %v1032_v0  ;;  %v1119_v8 = vpack.c.bf16 %v1034_v11, %v1031_v54  ;;  %v1042_v34 = vsel %vm1030_vm11, %v2092_v63, %v2057_v61 }
 0x203   : > { %v2087_v17 = vunpack.i.h.bf16 %v2085_v27  ;;  %v2086_v7 = vunpack.i.l.bf16 %v2085_v27  ;;  %v2061_v0 = vunpack.i.l.bf16 %v3074_v32  ;;  %v2112_v59 = vunpack.i.h.bf16 %v2110_v35 }
 0x204   : > { %1674 = vmatpush3.bf16.msra.mxu1 %v1121_v20  ;;  %v3143_v39 = vpop.permute.xlu1 %2119  ;;  %1147 = vmatprep.subr.bf16.mxu0 %v1120_v12  ;;  %v2067_v12 = vunpack.i.h.bf16 %v3087_v10  ;;  %v2111_v61 = vunpack.i.l.bf16 %v2110_v35  ;;  %v1092_v41 = vsel %vm1087_vm13, %v2106_v33, %v2107_v44  ;;  %v1093_v35 = vsel %vm1087_vm13, %v2107_v44, %v2062_v46 }
 0x205   : > { %1148 = vmatpush1.bf16.msra.mxu0 %v1119_v8  ;;  %1675 = vmatprep.subr.bf16.mxu1 %v3428_v60  ;;  %v1038_v11 = vsel %vm1030_vm11, %v2086_v7, %v2087_v17  ;;  %v1039_v58 = vsel %vm1030_vm11, %v2087_v17, %v2056_v26  ;;  %v1037_v40 = vsel %vm1030_vm11, %v2096_v55, %v2086_v7  ;;  %v2122_v27 = vunpack.i.h.bf16 %v3143_v39 }
 0x206   : > { %v2100_v54 = vpop.permute.xlu0 %2099  ;;  %v1123_v45 = vpack.c.bf16 %v1041_v15, %v1038_v11  ;;  %v1124_v42 = vpack.c.bf16 %v1042_v34, %v1039_v58  ;;  %v1122_v8 = vpack.c.bf16 %v1040_v49, %v1037_v40  ;;  %v2121_v20 = vunpack.i.l.bf16 %v3143_v39 }
 0x207   : > { %v2102_v63 = vunpack.i.h.bf16 %v2100_v54  ;;  %v2101_v32 = vunpack.i.l.bf16 %v2100_v54  ;;  %v2066_v26 = vunpack.i.l.bf16 %v3087_v10  ;;  %v1091_v11 = vsel %vm1087_vm13, %v2112_v59, %v2106_v33 }
 0x208   : > { %v2125_v17 = vpop.permute.xlu1 %2124  ;;  %1149 = vmatprep.subr.bf16.mxu0 %v1123_v45  ;;  %1676 = vmatpush3.bf16.msra.mxu1 %v1124_v42  ;;  %v926_v45 = vsel %vm924_vm14, %v2046_v53, %v2047_v9  ;;  %v865_v46 = vsel %vm864_vm9, %v1981_v19, %v2036_v14  ;;  %v1098_v33 = vsel %vm1087_vm13, %v2121_v20, %v2122_v27  ;;  %vm1457_vm11 = vcmask 654336  }
 0x209   : > { %1150 = vmatpush1.bf16.msra.mxu0 %v1122_v8  ;;  %1677 = vmatprep.subr.bf16.mxu1 %v3428_v60  ;;  %v1089_v57 = vsel %vm1087_vm13, %v2101_v32, %v2102_v63  ;;  %v1090_v7 = vsel %vm1087_vm13, %v2102_v63, %v2061_v0  ;;  %v1088_v39 = vsel %vm1087_vm13, %v2111_v61, %v2101_v32  ;;  %v2127_v58 = vunpack.i.h.bf16 %v2125_v17 }
 0x20a   : > { %v2115_v15 = vpop.permute.xlu0 %2114  ;;  %v1126_v55 = vpack.c.bf16 %v1092_v41, %v1089_v57  ;;  %v1127_v34 = vpack.c.bf16 %v1093_v35, %v1090_v7  ;;  %v1125_v10 = vpack.c.bf16 %v1091_v11, %v1088_v39  ;;  %v2126_v44 = vunpack.i.l.bf16 %v2125_v17  ;;  %v1112_v39 = vld [vmem:[%s3365_s1] sm:$0xf] }
 0x20b   : > { %v2117_v49 = vunpack.i.h.bf16 %v2115_v15  ;;  %v2116_v54 = vunpack.i.l.bf16 %v2115_v15  ;;  %v1099_v63 = vsel %vm1087_vm13, %v2122_v27, %v2067_v12  ;;  %v2042_v32 = vunpack.i.h.bf16 %v3064_v2 }
 0x20c   : > { %v2130_v0 = vpop.permute.xlu1 %2129  ;;  %1151 = vmatprep.subr.bf16.mxu0 %v1126_v55  ;;  %1678 = vmatpush3.bf16.msra.mxu1 %v1127_v34  ;;  %v910_v17 = vsel %vm909_vm10, %v2041_v62, %v1966_v24  ;;  %v1097_v7 = vsel %vm1087_vm13, %v2127_v58, %v2121_v20  ;;  %v964_v27 = vsel %vm608_vm12, %v3097_v3, %v3117_v25 }
 0x20d   : > { %v2131_v59 = vunpack.i.l.bf16 %v2130_v0  ;;  %1152 = vmatpush1.bf16.msra.mxu0 %v1125_v10  ;;  %1679 = vmatprep.subr.bf16.mxu1 %v3428_v60  ;;  %v1095_v42 = vsel %vm1087_vm13, %v2116_v54, %v2117_v49  ;;  %v1096_v40 = vsel %vm1087_vm13, %v2117_v49, %v2066_v26  ;;  %v1094_v61 = vsel %vm1087_vm13, %v2126_v44, %v2116_v54 }
 0x20e   : > { %v2135_v8 = vpop.permute.xlu0 %2134  ;;  %v1129_v14 = vpack.c.bf16 %v1098_v33, %v1095_v42  ;;  %v1130_v19 = vpack.c.bf16 %v1099_v63, %v1096_v40  ;;  %v2132_v26 = vunpack.i.h.bf16 %v2130_v0  ;;  %v1128_v15 = vpack.c.bf16 %v1097_v7, %v1094_v61 }
 0x20f   : > { %v2137_v41 = vunpack.i.h.bf16 %v2135_v8  ;;  %v2136_v57 = vunpack.i.l.bf16 %v2135_v8  ;;  %v925_v12 = vsel %vm924_vm14, %v2131_v59, %v2046_v53  ;;  %v967_v2 = vsel %vm612_vm2, %v964_v27, %v865_v46 }
 0x210   : > { %v872_v35 = vpop.permute.xlu1 %871  ;;  %1153 = vmatprep.subr.bf16.mxu0 %v1129_v14  ;;  %1680 = vmatpush3.bf16.msra.mxu1 %v1130_v19  ;;  %v977_v53 = vsel %vm612_vm2, %v3112_v50, %v926_v45  ;;  %v867_v3 = vsel %vm864_vm9, %v2037_v56, %v1982_v47  ;;  %v973_v20 = vsel %vm608_vm12, %v3107_v16, %v910_v17 }
 0x211   : > { %v880_v24 = vsel %vm879_vm3, %v872_v35, %v1996_v13  ;;  %v941_v62 = vsel %vm939_vm15, %v2136_v57, %v2137_v41  ;;  %1681 = vmatprep.subr.bf16.mxu1 %v3428_v60  ;;  %1154 = vmatpush1.bf16.msra.mxu0 %v1128_v15  ;;  %v912_v34 = vsel %vm909_vm10, %v1967_v1, %v2042_v32  ;;  %vm1459_vm10 = vcmask 785408  }
 0x212   : > { %v970_v25 = vsel %vm616_vm7, %v967_v2, %v880_v24  ;;  %v932_v13 = vpop.permute.xlu0 %931  ;;  %v980_v55 = vsel %vm616_vm7, %v977_v53, %v941_v62  ;;  %v976_v43 = vsel %vm612_vm2, %v973_v20, %v925_v12  ;;  %1155 = vmatprep.subr.bf16.mxu0 %v1132_v36  ;;  %v927_v56 = vsel %vm924_vm14, %v2047_v9, %v2132_v26  ;;  %v1242_v26 = vld [vmem:[%s3367_s3] sm:$0x3] }
 0x213   : > { %v940_v50 = vsel %vm939_vm15, %v932_v13, %v2136_v57  ;;  %v1135_v31 = vpack.c.bf16 %v980_v55, %v3055_v6  ;;  %v897_v36 = vsel %vm894_vm1, %v3453_v37, %v3452_v29  ;;  %v969_v6 = vsel %vm612_vm2, %v966_v23, %v867_v3 }
 0x214   : > { %v979_v47 = vsel %vm616_vm7, %v976_v43, %v940_v50  ;;  %v878_v1 = vpop.permute.xlu1 %877  ;;  %1682 = vmatpush3.bf16.msra.mxu1 %v1133_v30  ;;  %v975_v4 = vsel %vm608_vm12, %v897_v36, %v912_v34  ;;  %vm1455_vm1 = vcmask 523264  }
 0x215   : > { %v882_v16 = vsel %vm879_vm3, %v3454_v28, %v878_v1  ;;  %v1134_v9 = vpack.c.bf16 %v979_v47, %v970_v25  ;;  %1683 = vmatprep.subr.bf16.mxu1 %v3428_v60  ;;  %1156 = vmatpush1.bf16.msra.mxu0 %v3455_v51  ;;  %v978_v18 = vsel %vm612_vm2, %v975_v4, %v927_v56  ;;  %vm1451_vm3 = vcmask 261120  }
 0x216   : > { %v972_v22 = vsel %vm616_vm7, %v969_v6, %v882_v16  ;;  %v938_v5 = vpop.permute.xlu0 %937  ;;  %1157 = vmatprep.subr.bf16.mxu0 %v1135_v31 }
 0x217   : > { %v942_v30 = vsel %vm939_vm15, %v2137_v41, %v938_v5 }
 0x218   : > { %v981_v21 = vsel %vm616_vm7, %v978_v18, %v942_v30  ;;  %v2150_v18 = vld.sshfl [vmem:[%s2395_s13] sm:$0x33 pattern:$0x76325410] }
 0x219   : > { %v1136_v48 = vpack.c.bf16 %v981_v21, %v972_v22  ;;  %1158 = vmatpush1.bf16.msra.mxu0 %v1134_v9 }
 0x21b   : > { %1684 = vmatpush3.bf16.msra.mxu1 %v1136_v48 }
 0x21c   : > { %1689 = vmatprep.subr.mxu1 %v3428_v60  ;;  %1176 = vmatmul.mubr.bf16.vlgmr.msra.gmra.mrb[0].mxu0 %v1112_v39 }
 0x21d   : > { %1317 = vmatprep.mubr.f32.mxu0 %v3428_v60 }
 0x21e   : > { %1686 = vmatmul.mubr.bf16.vlgmr.msra.gmra.mrb[0].mxu1 %v1112_v39 }
 0x21f   : > { %1691 = vmatprep.mubr.msk.f32.mxu1 %vm2294_vm6, %v3428_v60  ;;  %vm1453_vm6 = vcmask 392192  }
 0x225   : > { %v1141_v52 = vpop.permute.xlu1 %1140 }
 0x227   : > { %v1247_v35 = vpop.permute.xlu0 %1246 }
 0x2ef   : > { %v1177_v11 = vpop.f32.mrb[0].mxu0 }
 0x2f0   : > { %v1178_v58 = vadd.f32 %v1177_v11, %v1141_v52  ;;  %v1179_v49 = vpop.f32.mrb[1].mxu0 }
 0x2f1   : > { %v1218_v54 = vpop.f32.mrb[0].mxu1  ;;  %v1180_v10 = vadd.f32 %v1179_v49, %v1141_v52  ;;  %v1181_v46 = vpop.f32.mrb[2].mxu0  ;;  %v1490_v49 = vcombine.high %v2150_v18, %v2150_v18 }
 0x2f2   : > { %v1219_v45 = vadd.f32 %v1218_v54, %v1141_v52  ;;  %v1687_v44 = vpop.f32.mrb[1].mxu1  ;;  %v1227_v0 = vmin.f32 %v1178_v58, 0.0  ;;  %v1182_v33 = vpop.f32.mrb[3].mxu0  ;;  %vm1224_vm2 = vcmp.gt.f32.partialorder %v1178_v58, 0.0 }
 0x2f3   : > { %v1221_v59 = vpop.f32.mrb[2].mxu1  ;;  %v1228_v42 = vmin.f32 %v1180_v10, 0.0  ;;  %vm1225_vm12 = vcmp.gt.f32.partialorder %v1180_v10, 0.0 }
 0x2f4   : > { %v1229_v40 = vmin.f32 %v1219_v45, 0.0  ;;  %v1688_v60 = vpop.f32.mrb[3].mxu1  ;;  %v1230_v63 = vmul.f32 1.442695, %v1227_v0  ;;  %vm1226_vm7 = vcmp.gt.f32.partialorder %v1219_v45, 0.0 }
 0x2f5   : > { %v1232_v32 = vmul.f32 1.442695, %v1228_v42 }
 0x2f6   : > { %v1234_v8 = vmul.f32 1.442695, %v1229_v40  ;;  %2143 = vpow2.f32 %v1230_v63 }
 0x2f7   : > { %2145 = vpow2.f32 %v1232_v32 }
 0x2f8   : > { %2147 = vpow2.f32 %v1234_v8 }
 0x300   : > { %v2144_v14 = vpop.eup %2143 }
 0x301   : > { %v2146_v19 = vpop.eup %2145  ;;  %v1640_v61 = vadd.f32 -1.0, %v2144_v14 }
 0x302   : > { %v2148_v17 = vpop.eup %2147  ;;  %v1641_v41 = vadd.f32 -1.0, %v2146_v19 }
 0x303   : > { %v1642_v57 = vadd.f32 -1.0, %v2148_v17  ;;  %v1239_v12 = vsel %vm1224_vm2, %v1178_v58, %v1640_v61 }
 0x304   : > { %v1240_v7 = vsel %vm1225_vm12, %v1180_v10, %v1641_v41 }
 0x305   : > { %1253 = vmatprep.subr.mxu0 %v1240_v7  ;;  %v1241_v27 = vsel %vm1226_vm7, %v1219_v45, %v1642_v57 }
 0x306   : > { %1254 = vmatpush1.msra.mxu0 %v1239_v12  ;;  %1690 = vmatpush3.msra.mxu1 %v1241_v27 }
 0x307   : > { %1692 = vmatmul.mubr.msk.f32.vlgmr.msra.gmra.mrb[4].mxu1 %vm1249_vm0, %v1242_v26  ;;  %1643 = vmatmul.mubr.msk.f32.vlgmr.msra.gmra.mrb[4].mxu0 %vm1249_vm0, %v1242_v26 }
 0x3da   : > { %v1390_v15 = vpop.f32.mrb[4].mxu1  ;;  %v1319_v2 = vpop.f32.mrb[4].mxu0 }
 0x3db   : > { %v1391_v24 = vadd.f32 %v1390_v15, %v1247_v35  ;;  %v1321_v62 = vpop.f32.mrb[5].mxu0  ;;  %v1693_v53 = vpop.f32.mrb[5].mxu1  ;;  %v1320_v3 = vadd.f32 %v1319_v2, %v1247_v35 }
 0x3dc   : > { %v1322_v25 = vadd.f32 %v1321_v62, %v1247_v35 }
 0x3dd   : > { %1437 = vrot.lane.b32.xlu1 %v1391_v24, %s2295_s28  ;;  %1432 = vrot.lane.b32.xlu0 %v1391_v24, %s2296_s26 }
 0x3e1   : > { %1440 = vrot.lane.b32.xlu0 %v1391_v24, %s2297_s11  ;;  %1395 = vrot.lane.b32.xlu1 %v1320_v3, %s2262_s14  ;;  %s2301_s14 = smov 23  }
 0x3e5   : > { %1443 = vrot.lane.b32.xlu0 %v1391_v24, %s2298_s18  ;;  %1398 = vrot.lane.b32.xlu1 %v1320_v3, %s2261_s12  ;;  %s3459_s12 = smov 79   ;;  %s3284_s18 = scalar_lea.hbm %s3370_s6, %s1656_s19 }
 0x3e9   : > { %1404 = vrot.lane.b32.xlu0 %v1320_v3, %s2257_s29  ;;  %1401 = vrot.lane.b32.xlu1 %v1320_v3, %s3456_s15  ;;  %s3269_s29 = sand.u32 1, %s2237_s22  }
 0x3ed   : > { %1423 = vrot.lane.b32.xlu0 %v1322_v25, %s2299_s16  ;;  %1408 = vrot.lane.b32.xlu1 %v1320_v3, %s3418_s10 }
 0x3f1   : > { %1426 = vrot.lane.b32.xlu0 %v1322_v25, %s2300_s20  ;;  %1420 = vrot.lane.b32.xlu1 %v1322_v25, %s3457_s17  ;;  %s1513_s20 = scalar_lea.sflag [#allocation6], %s3269_s29 }
 0x3f5   : > { %1410 = vrot.lane.b32.xlu0 %v1322_v25, %s3418_s10  ;;  %1430 = vrot.lane.b32.xlu1 %v1322_v25, %s2296_s26  ;;  %s1636_s10 = sshll.u32 %s3269_s29, 2 }
 0x3f6   : > { %s255_s28 = scalar_lea.vmem [#allocation5], %s1636_s10  ;;  %s3288_s15 = scalar_lea.vmem [#allocation3], %s1636_s10 }
 0x3f7   : > { %s1541_s26 = sshll.u32 %s255_s28, 4  ;;  %s1527_s16 = sshll.u32 %s3288_s15, 4  ;;  %s3286_s26 = int_to_ptr.vmem [resolvable:$true] %s1541_s26  ;;  %s3322_s16 = int_to_ptr.vmem [resolvable:$true] %s1527_s16 }
 0x3f8   : > { %s2151_s17 = scalar_lea.vmem %s3286_s26, 64 }
 0x3f9   : > { %1446 = vrot.lane.b32.xlu0 %v1391_v24, %s2301_s14  ;;  %1414 = vrot.lane.b32.xlu1 %v1322_v25, %s3458_s9  ;;  %p2152_p11 = scmp.ne.s32.totalorder %s3286_s26, %s2151_s17  ;;  %s2302_s14 = smov [#allocation5]  }
 0x3fa   : > { %s2155_s9 = sshll.u32 %s2302_s14, 4  ;;  %s2156_s9 = int_to_ptr.vmem [resolvable:$false] %s2155_s9 }
 0x3fb   : > { %p2153_p12 = pnand %p2152_p11, %p2377_p5  ;;  %p2158_p0 = scmp.lt.s32.totalorder %s3286_s26, %s2156_s9 }
 0x3fd   : > { %1417 = vrot.lane.b32.xlu1 %v1322_v25, %s3459_s12  ;;  %p2154_p13 = pneg %p2153_p12  ;;  %s2157_s12 = scalar_lea.vmem %s2156_s9, 128 }
 0x3fe   : > { %p2159_p1 = scmp.lt.s32.totalorder %s2157_s12, %s2151_s17 }
 0x400   : > { %p2160_p2 = por %p2159_p1, %p2158_p0 }
 0x402   : > { %p2161_p3 = pnand %p2160_p2, %p2154_p13 }
 0x44f   : > { %v1438_v20 = vpop.permute.xlu1 %1437  ;;  %v1433_v13 = vpop.permute.xlu0 %1432 }
 0x453   : > { %v1441_v55 = vpop.permute.xlu0 %1440  ;;  %v1396_v34 = vpop.permute.xlu1 %1395 }
 0x454   : > { %v1450_v28 = vsel %vm1449_vm4, %v1320_v3, %v1396_v34 }
 0x457   : > { %v1444_v50 = vpop.permute.xlu0 %1443  ;;  %v1399_v43 = vpop.permute.xlu1 %1398 }
 0x458   : > { %v1452_v22 = vsel %vm1451_vm3, %v1450_v28, %v1399_v43 }
 0x45b   : > { %v1405_v31 = vpop.permute.xlu0 %1404  ;;  %v1402_v56 = vpop.permute.xlu1 %1401 }
 0x45c   : > { %v1454_v4 = vsel %vm1453_vm6, %v1452_v22, %v1402_v56 }
 0x45d   : > { %v1456_v52 = vsel %vm1455_vm1, %v1454_v4, %v1405_v31 }
 0x45f   : > { %v1424_v47 = vpop.permute.xlu0 %1423  ;;  %v1409_v23 = vpop.permute.xlu1 %1408 }
 0x463   : > { %v1427_v1 = vpop.permute.xlu0 %1426  ;;  %v1421_v29 = vpop.permute.xlu1 %1420 }
 0x464   : > { %v1462_v37 = vsel %vm1449_vm4, %v1421_v29, %v1424_v47 }
 0x465   : > { %v1463_v16 = vsel %vm1451_vm3, %v1462_v37, %v1427_v1 }
 0x467   : > { %v1411_v36 = vpop.permute.xlu0 %1410  ;;  %v1431_v6 = vpop.permute.xlu1 %1430 }
 0x468   : > { %v1435_v9 = vsel %vm1434_vm5, %v1431_v6, %v1433_v13  ;;  %v1412_v30 = vsel %vm864_vm9, %v1409_v23, %v1411_v36 }
 0x469   : > { %v1464_v51 = vsel %vm1453_vm6, %v1463_v16, %v1435_v9  ;;  %v1458_v58 = vsel %vm1457_vm11, %v1456_v52, %v1412_v30 }
 0x46a   : > { %v1465_v5 = vsel %vm1455_vm1, %v1464_v51, %v1438_v20 }
 0x46b   : > { %v1447_v21 = vpop.permute.xlu0 %1446  ;;  %v1466_v48 = vsel %vm1457_vm11, %v1465_v5, %v1441_v55  ;;  %v1415_v39 = vpop.permute.xlu1 %1414 }
 0x46c   : > { %v1467_v38 = vsel %vm1459_vm10, %v1466_v48, %v1444_v50  ;;  %v1460_v10 = vsel %vm1459_vm10, %v1458_v58, %v1415_v39 }
 0x46d   : > { %v1468_v11 = vsel %vm787_vm8, %v1467_v38, %v1447_v21 }
 0x46e   : > { %v1482_v54 = vmul.f32 0.1, %v1468_v11 }
 0x46f   : > { %v1418_v45 = vpop.permute.xlu1 %1417 }
 0x470   : > { %v1461_v46 = vsel %vm787_vm8, %v1460_v10, %v1418_v45  ;;  %v1494_v33 = vadd.f32 %v1490_v49, %v1482_v54 }
 0x471   : > { %v1471_v44 = vcombine.low %v1461_v46, %v1468_v11  ;;  %v1481_v0 = vmul.f32 0.1, %v1461_v46 }
 0x473   : > { %v1493_v59 = vadd.f32 %v2150_v18, %v1481_v0  ;;  %1645 = vst.sshfl [vmem:[%s255_s28] sm:$0x33 pattern:$0x76325410] %v1471_v44 }
 0x474   : > { %2164 = shalt.err (!%p2161_p3)
}
 0x475   : > { %s2165_s10 = scalar_lea.hbm %s3284_s18, 64  ;;  %s2169_s11 = scalar_lea.hbm %s3370_s6, 128 }
 0x476   : > { %p2166_p4 = scmp.ne.s32.totalorder %s3284_s18, %s2165_s10  ;;  %p2170_p9 = scmp.lt.u32.totalorder %s3284_s18, %s3370_s6 }
 0x477   : > { %p2171_p10 = scmp.lt.u32.totalorder %s2169_s11, %s2165_s10  ;;  %p2173_p12 = scmp.lt.u32.totalorder %s2165_s10, %s3284_s18 }
 0x478   : > { %p2167_p7 = pnand %p2166_p4, %p2377_p5 }
 0x479   : > { %p2172_p11 = por %p2171_p10, %p2170_p9 }
 0x47a   : > { %p2168_p8 = pneg %p2167_p7 }
 0x47b   : > { %p2174_p13 = por %p2173_p12, %p2172_p11 }
 0x47d   : > { %p2175_p0 = pnand %p2174_p13, %p2168_p8 }
 0x47f   : > { %2178 = shalt.err (!%p2175_p0)
}
 0x480   : > { %1695 = dma.vmem_to_hbm [thread:$0]  (%p2377_p5), %s3286_s26, 64, %s3284_s18, %s1513_s20   ;;  %v1497_v42 = vcombine.low %v1493_v59, %v1494_v33 }
 0x481   : > { %s3318_s28 = scalar_lea.hbm %s3369_s5, %s1656_s19  ;;  %s1508_s10 = scalar_lea.sflag [#allocation4], %s3269_s29 }
 0x482   : > { %1646 = vst.sshfl [vmem:[%s3288_s15] sm:$0x33 pattern:$0x76325410] %v1497_v42  ;;  %s2179_s13 = scalar_lea.vmem %s3322_s16, 64  ;;  %s2303_s26 = smov [#allocation3]  }
 0x483   : > { %p2180_p1 = scmp.ne.s32.totalorder %s3322_s16, %s2179_s13  ;;  %s2183_s25 = sshll.u32 %s2303_s26, 4  ;;  %s2184_s25 = int_to_ptr.vmem [resolvable:$false] %s2183_s25 }
 0x484   : > { %s2185_s18 = scalar_lea.vmem %s2184_s25, 128  ;;  %p2186_p4 = scmp.lt.s32.totalorder %s3322_s16, %s2184_s25 }
 0x485   : > { %p2181_p2 = pnand %p2180_p1, %p2377_p5  ;;  %p2187_p7 = scmp.lt.s32.totalorder %s2185_s18, %s2179_s13 }
 0x487   : > { %p2182_p3 = pneg %p2181_p2  ;;  %p2188_p8 = por %p2187_p7, %p2186_p4 }
 0x489   : > { %p2189_p9 = pnand %p2188_p8, %p2182_p3 }
 0x48b   : > { %2192 = shalt.err (!%p2189_p9)
}
 0x48c   : > { %s2193_s29 = scalar_lea.hbm %s3318_s28, 64  ;;  %s2197_s20 = scalar_lea.hbm %s3369_s5, 128 }
 0x48d   : > { %p2194_p10 = scmp.ne.s32.totalorder %s3318_s28, %s2193_s29  ;;  %p2198_p13 = scmp.lt.u32.totalorder %s3318_s28, %s3369_s5 }
 0x48e   : > { %p2199_p0 = scmp.lt.u32.totalorder %s2197_s20, %s2193_s29  ;;  %p2201_p2 = scmp.lt.u32.totalorder %s2193_s29, %s3318_s28 }
 0x48f   : > { %p2195_p11 = pnand %p2194_p10, %p2377_p5 }
 0x490   : > { %p2200_p1 = por %p2199_p0, %p2198_p13 }
 0x491   : > { %p2196_p12 = pneg %p2195_p11 }
 0x492   : > { %p2202_p3 = por %p2201_p2, %p2200_p1 }
 0x494   : > { %p2203_p4 = pnand %p2202_p3, %p2196_p12 }
 0x496   : > { %2206 = shalt.err (!%p2203_p4)
}
 0x497   : > { %1694 = dma.vmem_to_hbm [thread:$0]  (%p2377_p5), %s3322_s16, 64, %s3318_s28, %s1508_s10  }
 0x498 PF: > { %p1705_p7 = scmp.ge.s32.totalorder %s2245_s24, 2  ;;  %s1553_s9 = sand.u32 1, %s2233_s21  }
 0x499   : > { %s1554_s17 = scalar_lea.sflag [#allocation4], %s1553_s9 }
 0x49a   : > { %p1699_p8 = pnand %p1705_p7, %p2381_p6 }
 0x49c   : > { %2224 = dma.done.wait (!%p1699_p8), %s1554_s17, 64  }
 0x49d   : > { %2226 = vsyncadd (!%p1699_p8), %s1554_s17, 4294967232  ;;  %s1563_s12 = scalar_lea.sflag [#allocation6], %s1553_s9 }
 0x49e   : > { %2228 = dma.done.wait (!%p1699_p8), %s1563_s12, 64  }
 0x49f   : > { %2230 = vsyncadd (!%p1699_p8), %s1563_s12, 4294967232  ;;  %p20_p5 = scmp.ge.s32.totalorder %s2364_s27, 4   ;;  %s3460_s21 = smov %s2237_s22 }
 0x4a0   : > { %s3461_s22 = smov %s2241_s23  ;;  %s3462_s23 = smov %s2375_s30 }
 0x4a1   : > { %s3463_s24 = smov %s2364_s27  ;;  %22 = sbr.rel (!%p20_p5) target bundleno = 5 (0x5), region = 92 }
 0x4a8   :  { %1568 = vsyncpa [#allocation4], 1 }
 0x4a9   :  { %1570 = vsyncpa [#allocation4 + $0x1], 1 }
 0x4aa   :  { %1571 = vsyncpa [#allocation6], 1 }
 0x4ab   :  { %1573 = vsyncpa [#allocation6 + $0x1], 1 }

</bundles_post_ra>
